<compile_context>
chip_gen: v6e
topology: v6e:2x2x1
jax: 0.10.0
libtpu: 0.0.40
codegen_flags: <defaults>
</compile_context>

<pallas_src>
import functools

import jax
import jax.numpy as jnp
from jax import lax
from jax.experimental import pallas as pl
from jax.experimental.pallas import tpu as pltpu


def ceil_div(a, b):
    return -(-a // b)


def _round_up(a, b):
    return ceil_div(a, b) * b


def _disc_block_kernel(xq_ref, w_ref, b_ref, g_ref, beta_ref, out_ref, stat_ref,
                       *, stride, TH, Wo_pad, Ho, Wo, Cin, Cpad, n_valid, eps,
                       neg_slope, needs_mask):
    # xq_ref : (s*s, Hq, Wq, Cin)   space-to-depth phases of the padded sample
    # w_ref  : (9, Cin, Cpad)       conv weight per (kh, kw) tap (zero-padded Cout)
    # b_ref  : (1, Cpad)            conv bias (f32, zero-padded)
    # g_ref / beta_ref : (TH*Wo_pad, Cpad)  LN affine, tiled along output rows
    # out_ref: (1, TH*Wo_pad, Cpad) lane-dense output slab
    # stat_ref: (2, Cpad) f32       per-channel partial sum / sum-of-squares
    p = pl.program_id(1)          # 0 = statistics pass, 1 = normalize pass
    t = pl.program_id(2)          # output-row tile index
    s = stride
    M = TH * Wo_pad

    # ---- conv: 9 accumulating MXU matmuls, contraction over Cin, f32 acc ----
    acc = jnp.zeros((M, Cpad), jnp.float32)
    for dh in range(3):
        for dw in range(3):
            ph = (dh % s) * s + (dw % s)                    # stride phase
            lhs = xq_ref[ph,
                         pl.ds(t * TH + dh // s, TH),
                         pl.ds(dw // s, Wo_pad),
                         :]                                 # (TH, Wo_pad, Cin)
            acc += jnp.dot(lhs.reshape(M, Cin), w_ref[dh * 3 + dw],
                           preferred_element_type=jnp.float32)
    y = acc + b_ref[...]        # (M, Cpad) f32; padded channels are exactly 0

    @pl.when(jnp.logical_and(p == 0, t == 0))
    def _init():
        stat_ref[...] = jnp.zeros_like(stat_ref)

    # ---- pass 0: fused sum / sum-of-squares accumulation (masked padding) ----
    @pl.when(p == 0)
    def _stats():
        if needs_mask:
            oh_i = lax.broadcasted_iota(jnp.int32, (TH, Wo_pad, Cpad), 0)
            ow_i = lax.broadcasted_iota(jnp.int32, (TH, Wo_pad, Cpad), 1)
            valid = ((t * TH + oh_i.reshape(M, Cpad)) < Ho) & \
                    (ow_i.reshape(M, Cpad) < Wo)
            ym = jnp.where(valid, y, 0.0)
        else:
            ym = y
        stat_ref[0:1, :] += jnp.sum(ym, axis=0, keepdims=True)
        stat_ref[1:2, :] += jnp.sum(ym * ym, axis=0, keepdims=True)
        out_ref[0] = y          # pre-norm store; fully overwritten in pass 1

    # ---- pass 1: normalize with whole-sample stats, affine, LeakyReLU ----
    @pl.when(p == 1)
    def _finalize():
        mu = jnp.sum(stat_ref[0:1, :]) / n_valid
        var = jnp.sum(stat_ref[1:2, :]) / n_valid - mu * mu
        inv = lax.rsqrt(var + eps)
        z = (y - mu) * inv * g_ref[...] + beta_ref[...]
        out_ref[0] = jnp.where(z > 0, z, neg_slope * z)


def discriminator_block(x, conv_w, conv_b, ln_w, ln_b, *, stride=1, eps=1e-5,
                        neg_slope=0.01, mm_dtype=jnp.bfloat16,
                        row_block_target=512):
    """x: [B, Cin, H, W] f32 (NCHW). Returns [B, Cout, H', W'] f32 (NCHW)."""
    B, Cin, H, W = x.shape
    Cout = conv_w.shape[0]
    s = int(stride)
    Ho, Wo = ceil_div(H, s), ceil_div(W, s)

    W_ALIGN = 16                                   # sublane-friendly for f32/bf16
    Wo_pad = _round_up(Wo, W_ALIGN)
    TH = max(1, min(Ho, ceil_div(row_block_target, Wo_pad)))
    n_t = ceil_div(Ho, TH)
    Ho_pad = n_t * TH
    Cpad = _round_up(Cout, 128)                    # lane-dense / MXU-wide output
    M = TH * Wo_pad

    Hq = Ho_pad + (2 // s)
    Wq = Wo_pad + (2 // s)
    Hp2, Wp2 = s * Hq, s * Wq

    # ---- glue: NCHW -> padded NHWC -> stride phases [B*s*s, Hq, Wq, Cin] ----
    x_nhwc = jnp.transpose(x, (0, 2, 3, 1))
    xp = jnp.pad(x_nhwc, ((0, 0),
                          (1, max(0, Hp2 - H - 1)),
                          (1, max(0, Wp2 - W - 1)),
                          (0, 0)))[:, :Hp2, :Wp2, :]
    xq = xp.reshape(B, Hq, s, Wq, s, Cin).transpose(0, 2, 4, 1, 3, 5)
    xq = xq.reshape(B * s * s, Hq, Wq, Cin).astype(mm_dtype)

    # ---- glue: parameters in kernel layout ----
    w9 = jnp.transpose(conv_w, (2, 3, 1, 0)).reshape(9, Cin, Cout)
    w9 = jnp.pad(w9, ((0, 0), (0, 0), (0, Cpad - Cout))).astype(mm_dtype)
    b_pad = jnp.pad(conv_b, (0, Cpad - Cout)).astype(jnp.float32).reshape(1, Cpad)

    def _ln_prep(a):
        a = jnp.transpose(a, (1, 2, 0))                              # (Ho,Wo,C)
        a = jnp.pad(a, ((0, Ho_pad - Ho), (0, Wo_pad - Wo), (0, Cpad - Cout)))
        return a.reshape(Ho_pad * Wo_pad, Cpad).astype(jnp.float32)

    g_mat, beta_mat = _ln_prep(ln_w), _ln_prep(ln_b)

    needs_mask = (Ho_pad != Ho) or (Wo_pad != Wo)
    kernel = functools.partial(
        _disc_block_kernel, stride=s, TH=TH, Wo_pad=Wo_pad, Ho=Ho, Wo=Wo,
        Cin=Cin, Cpad=Cpad, n_valid=float(Ho * Wo * Cout), eps=eps,
        neg_slope=neg_slope, needs_mask=needs_mask)

    flops = 2 * (2 * B * Ho_pad * Wo_pad) * 9 * Cin * Cpad
    bytes_accessed = (xq.size * xq.dtype.itemsize
                      + w9.size * w9.dtype.itemsize
                      + 2 * B * (g_mat.size + beta_mat.size) * 4
                      + 2 * B * Ho_pad * Wo_pad * Cpad * 4)

    out = pl.pallas_call(
        kernel,
        out_shape=jax.ShapeDtypeStruct((B, Ho_pad * Wo_pad, Cpad), jnp.float32),
        grid_spec=pltpu.PrefetchScalarGridSpec(
            num_scalar_prefetch=0,
            grid=(B, 2, n_t),                       # (batch, pass, row-tile)
            in_specs=[
                # input phases: resident per sample (fetched once per b)
                pl.BlockSpec((s * s, Hq, Wq, Cin), lambda b, p, t: (b, 0, 0, 0)),
                pl.BlockSpec((9, Cin, Cpad), lambda b, p, t: (0, 0, 0)),
                pl.BlockSpec((1, Cpad), lambda b, p, t: (0, 0)),
                pl.BlockSpec((M, Cpad), lambda b, p, t: (t, 0)),   # LN gamma
                pl.BlockSpec((M, Cpad), lambda b, p, t: (t, 0)),   # LN beta
            ],
            out_specs=pl.BlockSpec((1, M, Cpad), lambda b, p, t: (b, t, 0)),
            scratch_shapes=[pltpu.VMEM((2, Cpad), jnp.float32)],
        ),
        compiler_params=pltpu.CompilerParams(
            dimension_semantics=("parallel", "arbitrary", "arbitrary")),
        cost_estimate=pl.CostEstimate(flops=int(flops),
                                      transcendentals=int(B * n_t),
                                      bytes_accessed=int(bytes_accessed)),
    )(xq, w9, b_pad, g_mat, beta_mat)

    # back to NCHW, dropping padding
    out = out.reshape(B, Ho_pad, Wo_pad, Cpad)[:, :Ho, :Wo, :Cout]
    return jnp.transpose(out, (0, 3, 1, 2))


def _reference(x, conv_w, conv_b, ln_w, ln_b, *, stride, eps=1e-5,
               neg_slope=0.01):
    conv = lax.conv_general_dilated(
        x, conv_w, window_strides=(stride, stride), padding=((1, 1), (1, 1)),
        dimension_numbers=("NCHW", "OIHW", "NCHW"),
        precision=lax.Precision.HIGHEST,
        preferred_element_type=jnp.float32)
    conv = conv + conv_b[None, :, None, None]
    mu = conv.mean(axis=(1, 2, 3), keepdims=True)
    var = ((conv - mu) ** 2).mean(axis=(1, 2, 3), keepdims=True)
    y = (conv - mu) / jnp.sqrt(var + eps) * ln_w[None] + ln_b[None]
    return jnp.where(y > 0, y, neg_slope * y)


if __name__ == "__main__":
    def run_case(key, B, Cin, Cout, H, W, stride, mm_dtype, tol,
                 row_block_target=512, random_affine=False):
        Ho, Wo = ceil_div(H, stride), ceil_div(W, stride)
        kx, kw, kb, kg, kbt = jax.random.split(key, 5)
        x = jax.random.normal(kx, (B, Cin, H, W), dtype=jnp.float32)
        conv_w = 0.1 * jax.random.normal(kw, (Cout, Cin, 3, 3), dtype=jnp.float32)
        conv_b = 0.1 * jax.random.normal(kb, (Cout,), dtype=jnp.float32)
        if random_affine:
            ln_w = 1.0 + 0.1 * jax.random.normal(kg, (Cout, Ho, Wo), jnp.float32)
            ln_b = 0.1 * jax.random.normal(kbt, (Cout, Ho, Wo), jnp.float32)
        else:
            ln_w = jnp.ones((Cout, Ho, Wo), dtype=jnp.float32)   # PyTorch LN init
            ln_b = jnp.zeros((Cout, Ho, Wo), dtype=jnp.float32)
        out = discriminator_block(x, conv_w, conv_b, ln_w, ln_b, stride=stride,
                                  mm_dtype=mm_dtype,
                                  row_block_target=row_block_target)
        out = jax.block_until_ready(out)
        ref = _reference(x, conv_w, conv_b, ln_w, ln_b, stride=stride)
        assert out.shape == (B, Cout, Ho, Wo), (out.shape, (B, Cout, Ho, Wo))
        err = float(jnp.max(jnp.abs(out - ref)))
        assert jnp.allclose(out, ref, rtol=tol, atol=tol), err
        return err

    key = jax.random.PRNGKey(0)
    k1, k2, k3 = jax.random.split(key, 3)

    # Main config implied by the module: B=2, Cin=4, Cout=8, 16x16, stride=2.
    run_case(k1, 2, 4, 8, 16, 16, 2, jnp.float32, 1e-4)           # exactness
    run_case(k1, 2, 4, 8, 16, 16, 2, jnp.bfloat16, 5e-2)          # fast MXU path
    # Ragged shapes: multiple row tiles, padded Wo/Cout, random LN affine.
    run_case(k2, 2, 3, 5, 13, 10, 2, jnp.float32, 1e-4,
             row_block_target=16, random_affine=True)
    # stride=1 (module default).
    run_case(k3, 1, 4, 8, 9, 9, 1, jnp.float32, 1e-4)

    print("KERNEL_OK")
</pallas_src>

<mosaic_0001>
module attributes {stable_mosaic.version = 11 : i64} {
  func.func @_disc_block_kernel(%arg0: i32, %arg1: i32, %arg2: i32, %arg3: memref<4x9x17x4xf32, #tpu.memory_space<vmem>>, %arg4: memref<9x4x128xf32, #tpu.memory_space<vmem>>, %arg5: memref<1x128xf32, #tpu.memory_space<vmem>>, %arg6: memref<128x128xf32, #tpu.memory_space<vmem>>, %arg7: memref<128x128xf32, #tpu.memory_space<vmem>>, %arg8: memref<1x128x128xf32, #tpu.memory_space<vmem>>, %arg9: memref<2x128xf32, #tpu.memory_space<vmem>>) attributes {dimension_semantics = [#tpu.dimension_semantics<parallel>, #tpu.dimension_semantics<arbitrary>, #tpu.dimension_semantics<arbitrary>], iteration_bounds = array<i64: 2, 2, 1>, scalar_prefetch = 0 : i64, scratch_operands = 1 : i64, tpu.core_type = #tpu.core_type<tc>, window_params = [{transform_indices = @transform_0, window_bounds = array<i64: 4, 9, 17, 4>}, {pipeline_mode = #tpu.pipeline_mode<synchronous>, transform_indices = @transform_1, window_bounds = array<i64: 9, 4, 128>}, {pipeline_mode = #tpu.pipeline_mode<synchronous>, transform_indices = @transform_2, window_bounds = array<i64: 1, 128>}, {transform_indices = @transform_3, window_bounds = array<i64: 128, 128>}, {transform_indices = @transform_4, window_bounds = array<i64: 128, 128>}, {transform_indices = @transform_5, window_bounds = array<i64: 1, 128, 128>}]} {
    %cst = arith.constant 0.000000e+00 : f32
    %0 = vector.broadcast %cst : f32 to vector<128x128xf32>
    %c8_i32 = arith.constant 8 : i32
    %1 = arith.muli %arg2, %c8_i32 : i32
    %c0_i32 = arith.constant 0 : i32
    %2 = arith.addi %1, %c0_i32 : i32
    %c0 = arith.constant 0 : index
    %3 = arith.index_cast %2 : i32 to index
    %c0_0 = arith.constant 0 : index
    %c0_1 = arith.constant 0 : index
    %4 = vector.load %arg3[%c0, %3, %c0_0, %c0_1] : memref<4x9x17x4xf32, #tpu.memory_space<vmem>>, vector<1x8x16x4xf32>
    %5 = vector.shape_cast %4 : vector<1x8x16x4xf32> to vector<8x16x4xf32>
    %6 = vector.shape_cast %5 : vector<8x16x4xf32> to vector<128x4xf32>
    %c0_2 = arith.constant 0 : index
    %c0_3 = arith.constant 0 : index
    %c0_4 = arith.constant 0 : index
    %7 = vector.load %arg4[%c0_2, %c0_3, %c0_4] : memref<9x4x128xf32, #tpu.memory_space<vmem>>, vector<1x4x128xf32>
    %8 = vector.shape_cast %7 : vector<1x4x128xf32> to vector<4x128xf32>
    %cst_5 = arith.constant dense<0.000000e+00> : vector<128x128xf32>
    %9 = tpu.matmul %6, %8, %cst_5 {dimension_numbers = #tpu.dot_dimension_numbers<[1], [0], [0], [1], [0, 0, 1, 1], [], []>} : vector<128x4xf32>, vector<4x128xf32>, vector<128x128xf32> -> vector<128x128xf32>
    %10 = arith.addf %0, %9 : vector<128x128xf32>
    %c8_i32_6 = arith.constant 8 : i32
    %11 = arith.muli %arg2, %c8_i32_6 : i32
    %c0_i32_7 = arith.constant 0 : i32
    %12 = arith.addi %11, %c0_i32_7 : i32
    %c1 = arith.constant 1 : index
    %13 = arith.index_cast %12 : i32 to index
    %c0_8 = arith.constant 0 : index
    %c0_9 = arith.constant 0 : index
    %14 = vector.load %arg3[%c1, %13, %c0_8, %c0_9] : memref<4x9x17x4xf32, #tpu.memory_space<vmem>>, vector<1x8x16x4xf32>
    %15 = vector.shape_cast %14 : vector<1x8x16x4xf32> to vector<8x16x4xf32>
    %16 = vector.shape_cast %15 : vector<8x16x4xf32> to vector<128x4xf32>
    %c1_10 = arith.constant 1 : index
    %c0_11 = arith.constant 0 : index
    %c0_12 = arith.constant 0 : index
    %17 = vector.load %arg4[%c1_10, %c0_11, %c0_12] : memref<9x4x128xf32, #tpu.memory_space<vmem>>, vector<1x4x128xf32>
    %18 = vector.shape_cast %17 : vector<1x4x128xf32> to vector<4x128xf32>
    %cst_13 = arith.constant dense<0.000000e+00> : vector<128x128xf32>
    %19 = tpu.matmul %16, %18, %cst_13 {dimension_numbers = #tpu.dot_dimension_numbers<[1], [0], [0], [1], [0, 0, 1, 1], [], []>} : vector<128x4xf32>, vector<4x128xf32>, vector<128x128xf32> -> vector<128x128xf32>
    %20 = arith.addf %10, %19 : vector<128x128xf32>
    %c8_i32_14 = arith.constant 8 : i32
    %21 = arith.muli %arg2, %c8_i32_14 : i32
    %c0_i32_15 = arith.constant 0 : i32
    %22 = arith.addi %21, %c0_i32_15 : i32
    %c0_16 = arith.constant 0 : index
    %23 = arith.index_cast %22 : i32 to index
    %c1_17 = arith.constant 1 : index
    %c0_18 = arith.constant 0 : index
    %24 = vector.load %arg3[%c0_16, %23, %c1_17, %c0_18] : memref<4x9x17x4xf32, #tpu.memory_space<vmem>>, vector<1x8x16x4xf32>
    %25 = vector.shape_cast %24 : vector<1x8x16x4xf32> to vector<8x16x4xf32>
    %26 = vector.shape_cast %25 : vector<8x16x4xf32> to vector<128x4xf32>
    %c2 = arith.constant 2 : index
    %c0_19 = arith.constant 0 : index
    %c0_20 = arith.constant 0 : index
    %27 = vector.load %arg4[%c2, %c0_19, %c0_20] : memref<9x4x128xf32, #tpu.memory_space<vmem>>, vector<1x4x128xf32>
    %28 = vector.shape_cast %27 : vector<1x4x128xf32> to vector<4x128xf32>
    %cst_21 = arith.constant dense<0.000000e+00> : vector<128x128xf32>
    %29 = tpu.matmul %26, %28, %cst_21 {dimension_numbers = #tpu.dot_dimension_numbers<[1], [0], [0], [1], [0, 0, 1, 1], [], []>} : vector<128x4xf32>, vector<4x128xf32>, vector<128x128xf32> -> vector<128x128xf32>
    %30 = arith.addf %20, %29 : vector<128x128xf32>
    %c8_i32_22 = arith.constant 8 : i32
    %31 = arith.muli %arg2, %c8_i32_22 : i32
    %c0_i32_23 = arith.constant 0 : i32
    %32 = arith.addi %31, %c0_i32_23 : i32
    %c2_24 = arith.constant 2 : index
    %33 = arith.index_cast %32 : i32 to index
    %c0_25 = arith.constant 0 : index
    %c0_26 = arith.constant 0 : index
    %34 = vector.load %arg3[%c2_24, %33, %c0_25, %c0_26] : memref<4x9x17x4xf32, #tpu.memory_space<vmem>>, vector<1x8x16x4xf32>
    %35 = vector.shape_cast %34 : vector<1x8x16x4xf32> to vector<8x16x4xf32>
    %36 = vector.shape_cast %35 : vector<8x16x4xf32> to vector<128x4xf32>
    %c3 = arith.constant 3 : index
    %c0_27 = arith.constant 0 : index
    %c0_28 = arith.constant 0 : index
    %37 = vector.load %arg4[%c3, %c0_27, %c0_28] : memref<9x4x128xf32, #tpu.memory_space<vmem>>, vector<1x4x128xf32>
    %38 = vector.shape_cast %37 : vector<1x4x128xf32> to vector<4x128xf32>
    %cst_29 = arith.constant dense<0.000000e+00> : vector<128x128xf32>
    %39 = tpu.matmul %36, %38, %cst_29 {dimension_numbers = #tpu.dot_dimension_numbers<[1], [0], [0], [1], [0, 0, 1, 1], [], []>} : vector<128x4xf32>, vector<4x128xf32>, vector<128x128xf32> -> vector<128x128xf32>
    %40 = arith.addf %30, %39 : vector<128x128xf32>
    %c8_i32_30 = arith.constant 8 : i32
    %41 = arith.muli %arg2, %c8_i32_30 : i32
    %c0_i32_31 = arith.constant 0 : i32
    %42 = arith.addi %41, %c0_i32_31 : i32
    %c3_32 = arith.constant 3 : index
    %43 = arith.index_cast %42 : i32 to index
    %c0_33 = arith.constant 0 : index
    %c0_34 = arith.constant 0 : index
    %44 = vector.load %arg3[%c3_32, %43, %c0_33, %c0_34] : memref<4x9x17x4xf32, #tpu.memory_space<vmem>>, vector<1x8x16x4xf32>
    %45 = vector.shape_cast %44 : vector<1x8x16x4xf32> to vector<8x16x4xf32>
    %46 = vector.shape_cast %45 : vector<8x16x4xf32> to vector<128x4xf32>
    %c4 = arith.constant 4 : index
    %c0_35 = arith.constant 0 : index
    %c0_36 = arith.constant 0 : index
    %47 = vector.load %arg4[%c4, %c0_35, %c0_36] : memref<9x4x128xf32, #tpu.memory_space<vmem>>, vector<1x4x128xf32>
    %48 = vector.shape_cast %47 : vector<1x4x128xf32> to vector<4x128xf32>
    %cst_37 = arith.constant dense<0.000000e+00> : vector<128x128xf32>
    %49 = tpu.matmul %46, %48, %cst_37 {dimension_numbers = #tpu.dot_dimension_numbers<[1], [0], [0], [1], [0, 0, 1, 1], [], []>} : vector<128x4xf32>, vector<4x128xf32>, vector<128x128xf32> -> vector<128x128xf32>
    %50 = arith.addf %40, %49 : vector<128x128xf32>
    %c8_i32_38 = arith.constant 8 : i32
    %51 = arith.muli %arg2, %c8_i32_38 : i32
    %c0_i32_39 = arith.constant 0 : i32
    %52 = arith.addi %51, %c0_i32_39 : i32
    %c2_40 = arith.constant 2 : index
    %53 = arith.index_cast %52 : i32 to index
    %c1_41 = arith.constant 1 : index
    %c0_42 = arith.constant 0 : index
    %54 = vector.load %arg3[%c2_40, %53, %c1_41, %c0_42] : memref<4x9x17x4xf32, #tpu.memory_space<vmem>>, vector<1x8x16x4xf32>
    %55 = vector.shape_cast %54 : vector<1x8x16x4xf32> to vector<8x16x4xf32>
    %56 = vector.shape_cast %55 : vector<8x16x4xf32> to vector<128x4xf32>
    %c5 = arith.constant 5 : index
    %c0_43 = arith.constant 0 : index
    %c0_44 = arith.constant 0 : index
    %57 = vector.load %arg4[%c5, %c0_43, %c0_44] : memref<9x4x128xf32, #tpu.memory_space<vmem>>, vector<1x4x128xf32>
    %58 = vector.shape_cast %57 : vector<1x4x128xf32> to vector<4x128xf32>
    %cst_45 = arith.constant dense<0.000000e+00> : vector<128x128xf32>
    %59 = tpu.matmul %56, %58, %cst_45 {dimension_numbers = #tpu.dot_dimension_numbers<[1], [0], [0], [1], [0, 0, 1, 1], [], []>} : vector<128x4xf32>, vector<4x128xf32>, vector<128x128xf32> -> vector<128x128xf32>
    %60 = arith.addf %50, %59 : vector<128x128xf32>
    %c8_i32_46 = arith.constant 8 : i32
    %61 = arith.muli %arg2, %c8_i32_46 : i32
    %c1_i32 = arith.constant 1 : i32
    %62 = arith.addi %61, %c1_i32 : i32
    %c0_47 = arith.constant 0 : index
    %63 = arith.index_cast %62 : i32 to index
    %c0_48 = arith.constant 0 : index
    %c0_49 = arith.constant 0 : index
    %64 = vector.load %arg3[%c0_47, %63, %c0_48, %c0_49] : memref<4x9x17x4xf32, #tpu.memory_space<vmem>>, vector<1x8x16x4xf32>
    %65 = vector.shape_cast %64 : vector<1x8x16x4xf32> to vector<8x16x4xf32>
    %66 = vector.shape_cast %65 : vector<8x16x4xf32> to vector<128x4xf32>
    %c6 = arith.constant 6 : index
    %c0_50 = arith.constant 0 : index
    %c0_51 = arith.constant 0 : index
    %67 = vector.load %arg4[%c6, %c0_50, %c0_51] : memref<9x4x128xf32, #tpu.memory_space<vmem>>, vector<1x4x128xf32>
    %68 = vector.shape_cast %67 : vector<1x4x128xf32> to vector<4x128xf32>
    %cst_52 = arith.constant dense<0.000000e+00> : vector<128x128xf32>
    %69 = tpu.matmul %66, %68, %cst_52 {dimension_numbers = #tpu.dot_dimension_numbers<[1], [0], [0], [1], [0, 0, 1, 1], [], []>} : vector<128x4xf32>, vector<4x128xf32>, vector<128x128xf32> -> vector<128x128xf32>
    %70 = arith.addf %60, %69 : vector<128x128xf32>
    %c8_i32_53 = arith.constant 8 : i32
    %71 = arith.muli %arg2, %c8_i32_53 : i32
    %c1_i32_54 = arith.constant 1 : i32
    %72 = arith.addi %71, %c1_i32_54 : i32
    %c1_55 = arith.constant 1 : index
    %73 = arith.index_cast %72 : i32 to index
    %c0_56 = arith.constant 0 : index
    %c0_57 = arith.constant 0 : index
    %74 = vector.load %arg3[%c1_55, %73, %c0_56, %c0_57] : memref<4x9x17x4xf32, #tpu.memory_space<vmem>>, vector<1x8x16x4xf32>
    %75 = vector.shape_cast %74 : vector<1x8x16x4xf32> to vector<8x16x4xf32>
    %76 = vector.shape_cast %75 : vector<8x16x4xf32> to vector<128x4xf32>
    %c7 = arith.constant 7 : index
    %c0_58 = arith.constant 0 : index
    %c0_59 = arith.constant 0 : index
    %77 = vector.load %arg4[%c7, %c0_58, %c0_59] : memref<9x4x128xf32, #tpu.memory_space<vmem>>, vector<1x4x128xf32>
    %78 = vector.shape_cast %77 : vector<1x4x128xf32> to vector<4x128xf32>
    %cst_60 = arith.constant dense<0.000000e+00> : vector<128x128xf32>
    %79 = tpu.matmul %76, %78, %cst_60 {dimension_numbers = #tpu.dot_dimension_numbers<[1], [0], [0], [1], [0, 0, 1, 1], [], []>} : vector<128x4xf32>, vector<4x128xf32>, vector<128x128xf32> -> vector<128x128xf32>
    %80 = arith.addf %70, %79 : vector<128x128xf32>
    %c8_i32_61 = arith.constant 8 : i32
    %81 = arith.muli %arg2, %c8_i32_61 : i32
    %c1_i32_62 = arith.constant 1 : i32
    %82 = arith.addi %81, %c1_i32_62 : i32
    %c0_63 = arith.constant 0 : index
    %83 = arith.index_cast %82 : i32 to index
    %c1_64 = arith.constant 1 : index
    %c0_65 = arith.constant 0 : index
    %84 = vector.load %arg3[%c0_63, %83, %c1_64, %c0_65] : memref<4x9x17x4xf32, #tpu.memory_space<vmem>>, vector<1x8x16x4xf32>
    %85 = vector.shape_cast %84 : vector<1x8x16x4xf32> to vector<8x16x4xf32>
    %86 = vector.shape_cast %85 : vector<8x16x4xf32> to vector<128x4xf32>
    %c8 = arith.constant 8 : index
    %c0_66 = arith.constant 0 : index
    %c0_67 = arith.constant 0 : index
    %87 = vector.load %arg4[%c8, %c0_66, %c0_67] : memref<9x4x128xf32, #tpu.memory_space<vmem>>, vector<1x4x128xf32>
    %88 = vector.shape_cast %87 : vector<1x4x128xf32> to vector<4x128xf32>
    %cst_68 = arith.constant dense<0.000000e+00> : vector<128x128xf32>
    %89 = tpu.matmul %86, %88, %cst_68 {dimension_numbers = #tpu.dot_dimension_numbers<[1], [0], [0], [1], [0, 0, 1, 1], [], []>} : vector<128x4xf32>, vector<4x128xf32>, vector<128x128xf32> -> vector<128x128xf32>
    %90 = arith.addf %80, %89 : vector<128x128xf32>
    %c0_69 = arith.constant 0 : index
    %c0_70 = arith.constant 0 : index
    %91 = vector.load %arg5[%c0_69, %c0_70] : memref<1x128xf32, #tpu.memory_space<vmem>>, vector<1x128xf32>
    %92 = vector.broadcast %91 : vector<1x128xf32> to vector<128x128xf32>
    %93 = arith.addf %90, %92 : vector<128x128xf32>
    %c0_i32_71 = arith.constant 0 : i32
    %94 = arith.cmpi eq, %arg1, %c0_i32_71 : i32
    %c0_i32_72 = arith.constant 0 : i32
    %95 = arith.cmpi eq, %arg2, %c0_i32_72 : i32
    %96 = arith.andi %94, %95 : i1
    %97 = arith.extui %96 : i1 to i32
    %c0_i32_73 = arith.constant 0 : i32
    %98 = arith.cmpi ne, %97, %c0_i32_73 : i32
    scf.if %98 {
      %cst_78 = arith.constant 0.000000e+00 : f32
      %105 = vector.broadcast %cst_78 : f32 to vector<2x128xf32>
      %c0_79 = arith.constant 0 : index
      %c0_80 = arith.constant 0 : index
      %106 = vector.load %arg9[%c0_79, %c0_80] : memref<2x128xf32, #tpu.memory_space<vmem>>, vector<2x128xf32>
      tpu.vector_store %arg9[%c0_79, %c0_80], %105 {strides = array<i32>} : memref<2x128xf32, #tpu.memory_space<vmem>>, vector<2x128xf32>,
    } else {
    }
    %c0_i32_74 = arith.constant 0 : i32
    %99 = arith.cmpi eq, %arg1, %c0_i32_74 : i32
    %100 = arith.extui %99 : i1 to i32
    %c0_i32_75 = arith.constant 0 : i32
    %101 = arith.cmpi ne, %100, %c0_i32_75 : i32
    scf.if %101 {
      %105 = tpu.iota {dimensions = array<i32: 0>} : vector<8x16x128xi32>
      %106 = tpu.iota {dimensions = array<i32: 1>} : vector<8x16x128xi32>
      %c8_i32_78 = arith.constant 8 : i32
      %107 = arith.muli %arg2, %c8_i32_78 : i32
      %108 = vector.shape_cast %105 : vector<8x16x128xi32> to vector<128x128xi32>
      %109 = vector.broadcast %107 : i32 to vector<128x128xi32>
      %110 = arith.addi %109, %108 : vector<128x128xi32>
      %c8_i32_79 = arith.constant 8 : i32
      %111 = vector.broadcast %c8_i32_79 : i32 to vector<128x128xi32>
      %112 = arith.cmpi slt, %110, %111 : vector<128x128xi32>
      %113 = vector.shape_cast %106 : vector<8x16x128xi32> to vector<128x128xi32>
      %c8_i32_80 = arith.constant 8 : i32
      %114 = vector.broadcast %c8_i32_80 : i32 to vector<128x128xi32>
      %115 = arith.cmpi slt, %113, %114 : vector<128x128xi32>
      %116 = arith.andi %112, %115 : vector<128x128xi1>
      %cst_81 = arith.constant 0.000000e+00 : f32
      %117 = vector.broadcast %cst_81 : f32 to vector<128x128xf32>
      %118 = arith.select %116, %93, %117 : vector<128x128xi1>, vector<128x128xf32>
      %c0_82 = arith.constant 0 : index
      %c0_83 = arith.constant 0 : index
      %119 = vector.load %arg9[%c0_82, %c0_83] : memref<2x128xf32, #tpu.memory_space<vmem>>, vector<1x128xf32>
      %cst_84 = arith.constant dense<0.000000e+00> : vector<128xf32>
      %120 = vector.multi_reduction <add>, %118, %cst_84 [0] : vector<128x128xf32> to vector<128xf32>
      %121 = vector.shape_cast %120 : vector<128xf32> to vector<1x128xf32>
      %122 = arith.addf %119, %121 : vector<1x128xf32>
      %c0_85 = arith.constant 0 : index
      %c0_86 = arith.constant 0 : index
      %123 = vector.load %arg9[%c0_85, %c0_86] : memref<2x128xf32, #tpu.memory_space<vmem>>, vector<1x128xf32>
      tpu.vector_store %arg9[%c0_85, %c0_86], %122 {strides = array<i32>} : memref<2x128xf32, #tpu.memory_space<vmem>>, vector<1x128xf32>,
      %c1_87 = arith.constant 1 : index
      %c0_88 = arith.constant 0 : index
      %124 = vector.load %arg9[%c1_87, %c0_88] : memref<2x128xf32, #tpu.memory_space<vmem>>, vector<1x128xf32>
      %125 = arith.mulf %118, %118 : vector<128x128xf32>
      %cst_89 = arith.constant dense<0.000000e+00> : vector<128xf32>
      %126 = vector.multi_reduction <add>, %125, %cst_89 [0] : vector<128x128xf32> to vector<128xf32>
      %127 = vector.shape_cast %126 : vector<128xf32> to vector<1x128xf32>
      %128 = arith.addf %124, %127 : vector<1x128xf32>
      %c1_90 = arith.constant 1 : index
      %c0_91 = arith.constant 0 : index
      %129 = vector.load %arg9[%c1_90, %c0_91] : memref<2x128xf32, #tpu.memory_space<vmem>>, vector<1x128xf32>
      tpu.vector_store %arg9[%c1_90, %c0_91], %128 {strides = array<i32>} : memref<2x128xf32, #tpu.memory_space<vmem>>, vector<1x128xf32>,
      %c0_92 = arith.constant 0 : index
      %c0_93 = arith.constant 0 : index
      %c0_94 = arith.constant 0 : index
      %130 = vector.load %arg8[%c0_92, %c0_93, %c0_94] : memref<1x128x128xf32, #tpu.memory_space<vmem>>, vector<1x128x128xf32>
      %131 = vector.shape_cast %130 : vector<1x128x128xf32> to vector<128x128xf32>
      %132 = vector.shape_cast %93 : vector<128x128xf32> to vector<1x128x128xf32>
      tpu.vector_store %arg8[%c0_92, %c0_93, %c0_94], %132 {strides = array<i32>} : memref<1x128x128xf32, #tpu.memory_space<vmem>>, vector<1x128x128xf32>,
    } else {
    }
    %c1_i32_76 = arith.constant 1 : i32
    %102 = arith.cmpi eq, %arg1, %c1_i32_76 : i32
    %103 = arith.extui %102 : i1 to i32
    %c0_i32_77 = arith.constant 0 : i32
    %104 = arith.cmpi ne, %103, %c0_i32_77 : i32
    scf.if %104 {
      %c0_78 = arith.constant 0 : index
      %c0_79 = arith.constant 0 : index
      %105 = vector.load %arg9[%c0_78, %c0_79] : memref<2x128xf32, #tpu.memory_space<vmem>>, vector<1x128xf32>
      %106 = vector.shape_cast %105 : vector<1x128xf32> to vector<1x1x128xf32>
      %cst_80 = arith.constant dense<0.000000e+00> : vector<1xf32>
      %107 = vector.multi_reduction <add>, %106, %cst_80 [1, 2] : vector<1x1x128xf32> to vector<1xf32>
      %108 = vector.shape_cast %107 : vector<1xf32> to vector<1x1x1xf32>
      %109 = vector.extract %108[0, 0, 0] : f32 from vector<1x1x1xf32>
      %cst_81 = arith.constant 5.120000e+02 : f32
      %110 = arith.divf %109, %cst_81 : f32
      %c1_82 = arith.constant 1 : index
      %c0_83 = arith.constant 0 : index
      %111 = vector.load %arg9[%c1_82, %c0_83] : memref<2x128xf32, #tpu.memory_space<vmem>>, vector<1x128xf32>
      %112 = vector.shape_cast %111 : vector<1x128xf32> to vector<1x1x128xf32>
      %cst_84 = arith.constant dense<0.000000e+00> : vector<1xf32>
      %113 = vector.multi_reduction <add>, %112, %cst_84 [1, 2] : vector<1x1x128xf32> to vector<1xf32>
      %114 = vector.shape_cast %113 : vector<1xf32> to vector<1x1x1xf32>
      %115 = vector.extract %114[0, 0, 0] : f32 from vector<1x1x1xf32>
      %cst_85 = arith.constant 5.120000e+02 : f32
      %116 = arith.divf %115, %cst_85 : f32
      %117 = arith.mulf %110, %110 : f32
      %118 = arith.subf %116, %117 : f32
      %cst_86 = arith.constant 9.99999974E-6 : f32
      %119 = arith.addf %118, %cst_86 : f32
      %120 = math.rsqrt %119 : f32
      %121 = vector.broadcast %110 : f32 to vector<128x128xf32>
      %122 = arith.subf %93, %121 : vector<128x128xf32>
      %123 = vector.broadcast %120 : f32 to vector<128x128xf32>
      %124 = arith.mulf %122, %123 : vector<128x128xf32>
      %c0_87 = arith.constant 0 : index
      %c0_88 = arith.constant 0 : index
      %125 = vector.load %arg6[%c0_87, %c0_88] : memref<128x128xf32, #tpu.memory_space<vmem>>, vector<128x128xf32>
      %126 = arith.mulf %124, %125 : vector<128x128xf32>
      %c0_89 = arith.constant 0 : index
      %c0_90 = arith.constant 0 : index
      %127 = vector.load %arg7[%c0_89, %c0_90] : memref<128x128xf32, #tpu.memory_space<vmem>>, vector<128x128xf32>
      %128 = arith.addf %126, %127 : vector<128x128xf32>
      %cst_91 = arith.constant 0.000000e+00 : f32
      %129 = vector.broadcast %cst_91 : f32 to vector<128x128xf32>
      %130 = arith.cmpf ogt, %128, %129 : vector<128x128xf32>
      %cst_92 = arith.constant 0.00999999977 : f32
      %131 = vector.broadcast %cst_92 : f32 to vector<128x128xf32>
      %132 = arith.mulf %131, %128 : vector<128x128xf32>
      %133 = arith.select %130, %128, %132 : vector<128x128xi1>, vector<128x128xf32>
      %c0_93 = arith.constant 0 : index
      %c0_94 = arith.constant 0 : index
      %c0_95 = arith.constant 0 : index
      %134 = vector.load %arg8[%c0_93, %c0_94, %c0_95] : memref<1x128x128xf32, #tpu.memory_space<vmem>>, vector<1x128x128xf32>
      %135 = vector.shape_cast %134 : vector<1x128x128xf32> to vector<128x128xf32>
      %136 = vector.shape_cast %133 : vector<128x128xf32> to vector<1x128x128xf32>
      tpu.vector_store %arg8[%c0_93, %c0_94, %c0_95], %136 {strides = array<i32>} : memref<1x128x128xf32, #tpu.memory_space<vmem>>, vector<1x128x128xf32>,
    } else {
    }
    return
  }
  func.func @transform_0(%arg0: i32, %arg1: i32, %arg2: i32) -> (i32, i32, i32, i32) {
    %c0_i32 = arith.constant 0 : i32
    %c0_i32_0 = arith.constant 0 : i32
    %c0_i32_1 = arith.constant 0 : i32
    %c0_i32_2 = arith.constant 0 : i32
    return %arg0, %c0_i32, %c0_i32_0, %c0_i32_1 : i32, i32, i32, i32
  }
  func.func @transform_1(%arg0: i32, %arg1: i32, %arg2: i32) -> (i32, i32, i32) {
    %c0_i32 = arith.constant 0 : i32
    %c0_i32_0 = arith.constant 0 : i32
    %c0_i32_1 = arith.constant 0 : i32
    %c0_i32_2 = arith.constant 0 : i32
    return %c0_i32, %c0_i32_0, %c0_i32_1 : i32, i32, i32
  }
  func.func @transform_2(%arg0: i32, %arg1: i32, %arg2: i32) -> (i32, i32) {
    %c0_i32 = arith.constant 0 : i32
    %c0_i32_0 = arith.constant 0 : i32
    %c0_i32_1 = arith.constant 0 : i32
    return %c0_i32, %c0_i32_0 : i32, i32
  }
  func.func @transform_3(%arg0: i32, %arg1: i32, %arg2: i32) -> (i32, i32) {
    %c0_i32 = arith.constant 0 : i32
    %c0_i32_0 = arith.constant 0 : i32
    return %arg2, %c0_i32 : i32, i32
  }
  func.func @transform_4(%arg0: i32, %arg1: i32, %arg2: i32) -> (i32, i32) {
    %c0_i32 = arith.constant 0 : i32
    %c0_i32_0 = arith.constant 0 : i32
    return %arg2, %c0_i32 : i32, i32
  }
  func.func @transform_5(%arg0: i32, %arg1: i32, %arg2: i32) -> (i32, i32, i32) {
    %c0_i32 = arith.constant 0 : i32
    %c0_i32_0 = arith.constant 0 : i32
    return %arg0, %arg2, %c0_i32 : i32, i32, i32
  }
}

</mosaic_0001>

<bundles_post_ra>
// kernel: tpu_custom_call.1
= control target key start
LH: loop header
LB: loop body
LE: loop exit
PB: predicated region body
PF: predicated region fallthrough
CT: control target
= control target key end

     0   :  { %10 = vsyncpa [#allocation4], 0  ;;  %s4752_s0 = inlined_call_operand.vmem [shape: f32[8,9,17,4], index: 0, kind: input, shape index: {}]   ;;  %s4753_s1 = inlined_call_operand.vmem [shape: f32[9,4,128], index: 1, kind: input, shape index: {}]   ;;  %s4754_s2 = inlined_call_operand.vmem [shape: f32[1,128], index: 2, kind: input, shape index: {}]   ;;  %s4755_s3 = inlined_call_operand.vmem [shape: f32[128,128], index: 3, kind: input, shape index: {}]   ;;  %s4756_s4 = inlined_call_operand.vmem [shape: f32[128,128], index: 4, kind: input, shape index: {}]   ;;  %s4757_s5 = inlined_call_operand.hbm [shape: f32[2,128,128], index: 5, kind: output, shape index: {}]  }
   0x1   :  { %12 = vsyncpa [#allocation4 + $0x1], 0  ;;  %s3752_s18 = smov 0   ;;  %s3754_s19 = smov 0  }
   0x2   :  { %s3756_s20 = smov 0   ;;  %s3758_s21 = smov 0  }
   0x3   :  { %s3760_s22 = smov 0   ;;  %s3762_s23 = smov 0  }
   0x4   :  { %s3764_s24 = smov 0   ;;  %s3766_s25 = smov 0  }
   0x5 LB: > { %s2858_s26 = sadd.s32 4294967295, %s3716_s25   ;;  %s2859_s27 = sadd.s32 4294967294, %s3716_s25   ;;  %s3716_s25 = sphi %s3766_s25, %s18_s25   ;;  %s3712_s24 = sphi %s3764_s24, %s4776_s24   ;;  %s3708_s23 = sphi %s3762_s23, %s4775_s23   ;;  %s3704_s22 = sphi %s3760_s22, %s4774_s22   ;;  %s3700_s21 = sphi %s3758_s21, %s4773_s21   ;;  %s3696_s20 = sphi %s3756_s20, %s4772_s20   ;;  %s3692_s19 = sphi %s3754_s19, %s4771_s19   ;;  %s3688_s18 = sphi %s3752_s18, %s4770_s18  }
   0x6   : > { %s33_s28 = sadd.s32 1, %s3708_s23  ;;  %s37_s29 = sadd.s32 1, %s3712_s24 }
   0x7   : > { %p35_p0 = scmp.ge.s32.totalorder %s33_s28, 2  ;;  %p176_p1 = scmp.ne.s32.totalorder %s3696_s20, %s3692_s19 }
   0x8   : > { %p177_p2 = scmp.eq.s32.totalorder %s2858_s26, 3  ;;  %p182_p4 = scmp.ne.s32.totalorder %s3692_s19, %s3688_s18 }
   0x9   : > { %s4778_s28 = smov (%p35_p0, %s33_s28), 0  ;;  %s4780_s29 = smov (!%p35_p0, %s37_s29), %s3712_s24 }
   0xa   : > { %p3801_p3 = por %p177_p2, %p176_p1  ;;  %p39_p5 = scmp.ge.s32.totalorder %s4780_s29, 2 }
   0xb   : > { %p183_p6 = scmp.eq.s32.totalorder %s2859_s27, 3  ;;  %p2864_p7 = scmp.ge.s32.totalorder %s3716_s25, 1 }
   0xc   : > { %p235_p8 = scmp.lt.s32.totalorder %s3716_s25, 5  ;;  %s4782_s29 = smov (%p39_p5, %s4780_s29), 0 }
   0xd   : > { %p3811_p9 = por %p183_p6, %p182_p4  ;;  %s161_s7 = ssub.s32 %s3712_s24, %s4782_s29 }
   0xe   : > { %p236_p10 = pnand %p2864_p7, %p235_p8  ;;  %s166_s8 = sadd.s32 1, %s3696_s20 }
   0xf   : > { %p164_p11 = scmp.eq.s32.totalorder %s161_s7, 0 }
  0x10   : > { %239 = sbr.rel (%p236_p10) target bundleno = 748 (0x2ec), region = 40 }
  0x11   : > { %s3819_s9 = scalar_select %p164_p11, %s3696_s20, %s166_s8  }
  0x15   : > { %v2884_v0 = vld [vmem:[%s4753_s1 + $0x4] sm:$0xf]  ;;  %vm383_vm0 = vcmask 1043456   ;;  %s4758_s12 = sand.u32 1, %s3692_s19   ;;  %s2866_s13 = sshll.u32 %s3704_s22, 2  ;;  %vm334_vm1 = vcmask 31744  }
  0x16   : > { %3539 = vmatprep.subr.msk.mxu1 %vm383_vm0, %v2884_v0  ;;  %s3829_s14 = sshll.u32 %s4758_s12, 7  ;;  %3305 = vmatprep.subr.msk.mxu0 %vm383_vm0, %v2884_v0  ;;  %p275_p12 = scmp.lt.s32.totalorder %s2866_s13, 7  ;;  %v313_v1 = vld [vmem:[%s4753_s1] sm:$0xf]  ;;  %v2919_v2 = vld [vmem:[%s4753_s1 + $0x8] sm:$0xf] }
  0x17   : > { %3540 = vmatpush3.msk.msra.mxu1 %vm383_vm0, %v2884_v0  ;;  %3306 = vmatpush3.msk.msra.mxu0 %vm383_vm0, %v2884_v0  ;;  %v2953_v9 = vld [vmem:[%s4753_s1 + $0xc] sm:$0xf]  ;;  %v2987_v10 = vld [vmem:[%s4753_s1 + $0x10] sm:$0xf]  ;;  %v3948_v27 = vld [vmem:[%s4753_s1 + $0x14] sm:$0xf] }
  0x18   : > { %s4784_s13 = smov (!%p275_p12, %s2866_s13), 7  ;;  %3331 = vmatprep.subr.msk.mxu1 %vm383_vm0, %v313_v1  ;;  %3357 = vmatprep.subr.msk.mxu0 %vm383_vm0, %v2919_v2  ;;  %v3953_v28 = vld [vmem:[%s4753_s1 + $0x18] sm:$0xf]  ;;  %v4108_v61 = vld [vmem:[%s4753_s1 + $0x1c] sm:$0xf]  ;;  %p2370_p13 = scmp.eq.s32.totalorder %s3700_s21, 0 }
  0x19   : > { %s3541_s27 = smul.u32 216, %s4784_s13  ;;  %v4113_v62 = vld [vmem:[%s4753_s1 + $0x20] sm:$0xf]  ;;  %s4484_s17 = scalar_lea.vmem [#allocation3], %s3829_s14 }
  0x1b   : > { %s3845_s10 = scalar_lea.vmem %s4752_s0, %s3541_s27 }
  0x1c   : > { %v2868_v3 = vld [vmem:[%s3845_s10 + $0xd8] sm:$0xff]  ;;  %v2869_v5 = vld [vmem:[%s3845_s10 + $0xe0] sm:$0xff]  ;;  %v3859_v7 = vld [vmem:[%s3845_s10 + $0xf0] sm:$0xff] }
  0x1d   : > { %v3849_v4 = vld [vmem:[%s3845_s10 + $0x138] sm:$0xff]  ;;  %3307 = vmatprep.mubr.msk.f32.mxu0 %vm334_vm1, %v2868_v3  ;;  %v3856_v6 = vld [vmem:[%s3845_s10 + $0x140] sm:$0xff]  ;;  %v3862_v8 = vld [vmem:[%s3845_s10 + $0x150] sm:$0xff] }
  0x1e   : > { %3319 = vmatprep.mubr.msk.f32.mxu1 %vm334_vm1, %v3849_v4  ;;  %3308 = vmatmul.mubr.msk.f32.vlgmr.msra.gmra.mxu0 %vm334_vm1, %v2869_v5  ;;  %v3876_v11 = vld [vmem:[%s3845_s10 + $0xf8] sm:$0xff]  ;;  %v3886_v13 = vld [vmem:[%s3845_s10 + $0x108] sm:$0xff]  ;;  %v3902_v15 = vld [vmem:[%s3845_s10 + $0x110] sm:$0xff] }
  0x1f   : > { %3320 = vmatmul.mubr.msk.f32.vlgmr.msra.gmra.mxu1 %vm334_vm1, %v3856_v6  ;;  %3358 = vmatpush3.msk.msra.mxu0 %vm383_vm0, %v2919_v2  ;;  %v3879_v12 = vld [vmem:[%s3845_s10 + $0x158] sm:$0xff]  ;;  %v3889_v14 = vld [vmem:[%s3845_s10 + $0x168] sm:$0xff]  ;;  %v3905_v16 = vld [vmem:[%s3845_s10 + $0x170] sm:$0xff] }
  0x20   : > { %3332 = vmatpush3.msk.msra.mxu1 %vm383_vm0, %v313_v1  ;;  %3310 = vmatprep.mubr.msk.f32.mxu0 %vm334_vm1, %v3859_v7  ;;  %v3908_v17 = vld [vmem:[%s3845_s10 + $0x120] sm:$0xff]  ;;  %v3922_v19 = vld [vmem:[%s3845_s10 + $0x128] sm:$0xff]  ;;  %v3938_v25 = vld [vmem:[%s3845_s10 + $0x18] sm:$0xff] }
  0x21   : > { %3322 = vmatprep.mubr.msk.f32.mxu1 %vm334_vm1, %v3862_v8  ;;  %3383 = vmatprep.subr.msk.mxu1 %vm383_vm0, %v2953_v9  ;;  %v3911_v18 = vld [vmem:[%s3845_s10 + $0x180] sm:$0xff]  ;;  %v3925_v20 = vld [vmem:[%s3845_s10 + $0x188] sm:$0xff]  ;;  %v3968_v31 = vld [vmem:[%s3845_s10 + $0x30] sm:$0xff] }
  0x22   : > { %3409 = vmatprep.subr.msk.mxu0 %vm383_vm0, %v2987_v10  ;;  %3311 = vmatmul.mubr.msk.f32.gmra.mxu0 %vm334_vm1, %v3876_v11  ;;  %v297_v21 = vld [vmem:[%s3845_s10] sm:$0xff]  ;;  %v298_v23 = vld [vmem:[%s3845_s10 + $0x8] sm:$0xff]  ;;  %v3971_v32 = vld [vmem:[%s3845_s10 + $0x31] sm:$0xff] }
  0x23   : > { %3323 = vmatmul.mubr.msk.f32.gmra.mxu1 %vm334_vm1, %v3879_v12  ;;  %3313 = vmatprep.mubr.msk.f32.mxu0 %vm334_vm1, %v3886_v13  ;;  %v728_v22 = vld [vmem:[%s3845_s10 + $0x1] sm:$0xff]  ;;  %v729_v24 = vld [vmem:[%s3845_s10 + $0x9] sm:$0xff]  ;;  %v3941_v26 = vld [vmem:[%s3845_s10 + $0x19] sm:$0xff] }
  0x24   : > { %3325 = vmatprep.mubr.msk.f32.mxu1 %vm334_vm1, %v3889_v14  ;;  %v3958_v29 = vld [vmem:[%s3845_s10 + $0x20] sm:$0xff]  ;;  %v3986_v33 = vld [vmem:[%s3845_s10 + $0x38] sm:$0xff]  ;;  %v3992_v35 = vld [vmem:[%s3845_s10 + $0x48] sm:$0xff] }
  0x25   : > { %v3961_v30 = vld [vmem:[%s3845_s10 + $0x21] sm:$0xff]  ;;  %v3989_v34 = vld [vmem:[%s3845_s10 + $0x39] sm:$0xff]  ;;  %v3995_v36 = vld [vmem:[%s3845_s10 + $0x49] sm:$0xff] }
  0x26   : > { %3314 = vmatmul.mubr.msk.f32.gmra.mxu0 %vm334_vm1, %v3902_v15  ;;  %v4006_v37 = vld [vmem:[%s3845_s10 + $0x50] sm:$0xff]  ;;  %v4012_v39 = vld [vmem:[%s3845_s10 + $0x60] sm:$0xff]  ;;  %v4026_v41 = vld [vmem:[%s3845_s10 + $0x68] sm:$0xff] }
  0x27   : > { %3326 = vmatmul.mubr.msk.f32.gmra.mxu1 %vm334_vm1, %v3905_v16  ;;  %3316 = vmatprep.mubr.msk.f32.mxu0 %vm334_vm1, %v3908_v17  ;;  %v4009_v38 = vld [vmem:[%s3845_s10 + $0x51] sm:$0xff]  ;;  %v4015_v40 = vld [vmem:[%s3845_s10 + $0x61] sm:$0xff]  ;;  %v4029_v42 = vld [vmem:[%s3845_s10 + $0x69] sm:$0xff] }
  0x28   : > { %3328 = vmatprep.mubr.msk.f32.mxu1 %vm334_vm1, %v3911_v18  ;;  %v4032_v43 = vld [vmem:[%s3845_s10 + $0x78] sm:$0xff]  ;;  %v4046_v45 = vld [vmem:[%s3845_s10 + $0x80] sm:$0xff]  ;;  %v4052_v47 = vld [vmem:[%s3845_s10 + $0x90] sm:$0xff] }
  0x29   : > { %v4035_v44 = vld [vmem:[%s3845_s10 + $0x79] sm:$0xff]  ;;  %v4049_v46 = vld [vmem:[%s3845_s10 + $0x81] sm:$0xff]  ;;  %v4055_v48 = vld [vmem:[%s3845_s10 + $0x91] sm:$0xff] }
  0x2a   : > { %3317 = vmatmul.mubr.msk.f32.gmra.mxu0 %vm334_vm1, %v3922_v19  ;;  %v4066_v49 = vld [vmem:[%s3845_s10 + $0x98] sm:$0xff]  ;;  %v4072_v51 = vld [vmem:[%s3845_s10 + $0xa8] sm:$0xff]  ;;  %v4086_v53 = vld [vmem:[%s3845_s10 + $0xb0] sm:$0xff] }
  0x2b   : > { %3329 = vmatmul.mubr.msk.f32.gmra.mxu1 %vm334_vm1, %v3925_v20  ;;  %3359 = vmatprep.mubr.msk.f32.mxu0 %vm334_vm1, %v728_v22  ;;  %v4069_v50 = vld [vmem:[%s3845_s10 + $0x99] sm:$0xff]  ;;  %v4075_v52 = vld [vmem:[%s3845_s10 + $0xa9] sm:$0xff]  ;;  %v4089_v54 = vld [vmem:[%s3845_s10 + $0xb1] sm:$0xff] }
  0x2c   : > { %3333 = vmatprep.mubr.msk.f32.mxu1 %vm334_vm1, %v297_v21  ;;  %v2937_v55 = vld [vmem:[%s3845_s10 + $0x1b0] sm:$0xff]  ;;  %v2971_v56 = vld [vmem:[%s3845_s10 + $0x288] sm:$0xff]  ;;  %v2938_v57 = vld [vmem:[%s3845_s10 + $0x1b8] sm:$0xff] }
  0x2d   : > { %v2972_v58 = vld [vmem:[%s3845_s10 + $0x290] sm:$0xff]  ;;  %v2939_v59 = vld [vmem:[%s3845_s10 + $0x1c8] sm:$0xff]  ;;  %v2973_v60 = vld [vmem:[%s3845_s10 + $0x2a0] sm:$0xff] }
  0x2e   : > { %3360 = vmatmul.mubr.msk.f32.vlgmr.msra.gmra.mxu0 %vm334_vm1, %v729_v24  ;;  %v2940_v63 = vld [vmem:[%s3845_s10 + $0x1d0] sm:$0xff]  ;;  %v2974_v0 = vld [vmem:[%s3845_s10 + $0x2a8] sm:$0xff]  ;;  %v2941_v1 = vld [vmem:[%s3845_s10 + $0x1e0] sm:$0xff] }
  0x2f   : > { %3334 = vmatmul.mubr.msk.f32.vlgmr.msra.gmra.mxu1 %vm334_vm1, %v298_v23  ;;  %3410 = vmatpush3.msk.msra.mxu0 %vm383_vm0, %v2987_v10  ;;  %v2975_v2 = vld [vmem:[%s3845_s10 + $0x2b8] sm:$0xff]  ;;  %v2942_v3 = vld [vmem:[%s3845_s10 + $0x1e8] sm:$0xff]  ;;  %v2976_v5 = vld [vmem:[%s3845_s10 + $0x2c0] sm:$0xff] }
  0x30   : > { %3384 = vmatpush3.msk.msra.mxu1 %vm383_vm0, %v2953_v9  ;;  %3336 = vmatprep.mubr.msk.f32.mxu1 %vm334_vm1, %v3938_v25  ;;  %v2943_v9 = vld [vmem:[%s3845_s10 + $0x1f8] sm:$0xff]  ;;  %v2977_v10 = vld [vmem:[%s3845_s10 + $0x2d0] sm:$0xff]  ;;  %v2944_v21 = vld [vmem:[%s3845_s10 + $0x200] sm:$0xff] }
  0x31   : > { %3362 = vmatprep.mubr.msk.f32.mxu0 %vm334_vm1, %v3941_v26  ;;  %3435 = vmatprep.subr.msk.mxu1 %vm383_vm0, %v3948_v27  ;;  %v2978_v22 = vld [vmem:[%s3845_s10 + $0x2d8] sm:$0xff]  ;;  %v2945_v23 = vld [vmem:[%s3845_s10 + $0x210] sm:$0xff]  ;;  %v2979_v24 = vld [vmem:[%s3845_s10 + $0x2e8] sm:$0xff] }
  0x32   : > { %3461 = vmatprep.subr.msk.mxu0 %vm383_vm0, %v3953_v28  ;;  %3363 = vmatmul.mubr.msk.f32.gmra.mxu0 %vm334_vm1, %v3961_v30 }
  0x33   : > { %3337 = vmatmul.mubr.msk.f32.gmra.mxu1 %vm334_vm1, %v3958_v29  ;;  %3365 = vmatprep.mubr.msk.f32.mxu0 %vm334_vm1, %v3971_v32 }
  0x34   : > { %3339 = vmatprep.mubr.msk.f32.mxu1 %vm334_vm1, %v3968_v31 }
  0x36   : > { %3366 = vmatmul.mubr.msk.f32.gmra.mxu0 %vm334_vm1, %v3989_v34 }
  0x37   : > { %3340 = vmatmul.mubr.msk.f32.gmra.mxu1 %vm334_vm1, %v3986_v33  ;;  %3368 = vmatprep.mubr.msk.f32.mxu0 %vm334_vm1, %v3995_v36 }
  0x38   : > { %3342 = vmatprep.mubr.msk.f32.mxu1 %vm334_vm1, %v3992_v35 }
  0x3a   : > { %3369 = vmatmul.mubr.msk.f32.gmra.mxu0 %vm334_vm1, %v4009_v38 }
  0x3b   : > { %3343 = vmatmul.mubr.msk.f32.gmra.mxu1 %vm334_vm1, %v4006_v37  ;;  %3371 = vmatprep.mubr.msk.f32.mxu0 %vm334_vm1, %v4015_v40 }
  0x3c   : > { %3345 = vmatprep.mubr.msk.f32.mxu1 %vm334_vm1, %v4012_v39 }
  0x3e   : > { %3372 = vmatmul.mubr.msk.f32.gmra.mxu0 %vm334_vm1, %v4029_v42 }
  0x3f   : > { %3346 = vmatmul.mubr.msk.f32.gmra.mxu1 %vm334_vm1, %v4026_v41  ;;  %3374 = vmatprep.mubr.msk.f32.mxu0 %vm334_vm1, %v4035_v44 }
  0x40   : > { %3348 = vmatprep.mubr.msk.f32.mxu1 %vm334_vm1, %v4032_v43 }
  0x42   : > { %3375 = vmatmul.mubr.msk.f32.gmra.mxu0 %vm334_vm1, %v4049_v46 }
  0x43   : > { %3349 = vmatmul.mubr.msk.f32.gmra.mxu1 %vm334_vm1, %v4046_v45  ;;  %3377 = vmatprep.mubr.msk.f32.mxu0 %vm334_vm1, %v4055_v48 }
  0x44   : > { %3351 = vmatprep.mubr.msk.f32.mxu1 %vm334_vm1, %v4052_v47 }
  0x46   : > { %3378 = vmatmul.mubr.msk.f32.gmra.mxu0 %vm334_vm1, %v4069_v50 }
  0x47   : > { %3352 = vmatmul.mubr.msk.f32.gmra.mxu1 %vm334_vm1, %v4066_v49  ;;  %3380 = vmatprep.mubr.msk.f32.mxu0 %vm334_vm1, %v4075_v52 }
  0x48   : > { %3354 = vmatprep.mubr.msk.f32.mxu1 %vm334_vm1, %v4072_v51 }
  0x4a   : > { %3381 = vmatmul.mubr.msk.f32.gmra.mxu0 %vm334_vm1, %v4089_v54 }
  0x4b   : > { %3355 = vmatmul.mubr.msk.f32.gmra.mxu1 %vm334_vm1, %v4086_v53  ;;  %3411 = vmatprep.mubr.msk.f32.mxu0 %vm334_vm1, %v2971_v56  ;;  %v2981_v56 = vld [vmem:[%s3845_s10 + $0x300] sm:$0xff] }
  0x4c   : > { %3385 = vmatprep.mubr.msk.f32.mxu1 %vm334_vm1, %v2937_v55  ;;  %v2947_v55 = vld [vmem:[%s3845_s10 + $0x228] sm:$0xff] }
  0x4e   : > { %3412 = vmatmul.mubr.msk.f32.vlgmr.msra.gmra.mxu0 %vm334_vm1, %v2972_v58  ;;  %v2982_v58 = vld [vmem:[%s3845_s10 + $0x308] sm:$0xff] }
  0x4f   : > { %3386 = vmatmul.mubr.msk.f32.vlgmr.msra.gmra.mxu1 %vm334_vm1, %v2938_v57  ;;  %3462 = vmatpush3.msk.msra.mxu0 %vm383_vm0, %v3953_v28  ;;  %v2980_v28 = vld [vmem:[%s3845_s10 + $0x2f0] sm:$0xff] }
  0x50   : > { %3436 = vmatpush3.msk.msra.mxu1 %vm383_vm0, %v3948_v27  ;;  %3388 = vmatprep.mubr.msk.f32.mxu1 %vm334_vm1, %v2939_v59  ;;  %v2946_v27 = vld [vmem:[%s3845_s10 + $0x218] sm:$0xff]  ;;  %v2948_v57 = vld [vmem:[%s3845_s10 + $0x230] sm:$0xff]  ;;  %v2949_v59 = vld [vmem:[%s3845_s10 + $0x240] sm:$0xff] }
  0x51   : > { %3414 = vmatprep.mubr.msk.f32.mxu0 %vm334_vm1, %v2973_v60  ;;  %3487 = vmatprep.subr.msk.mxu1 %vm383_vm0, %v4108_v61  ;;  %v2983_v60 = vld [vmem:[%s3845_s10 + $0x318] sm:$0xff] }
  0x52   : > { %3513 = vmatprep.subr.msk.mxu0 %vm383_vm0, %v4113_v62  ;;  %3415 = vmatmul.mubr.msk.f32.gmra.mxu0 %vm334_vm1, %v2974_v0  ;;  %v2984_v0 = vld [vmem:[%s3845_s10 + $0x320] sm:$0xff] }
  0x53   : > { %3389 = vmatmul.mubr.msk.f32.gmra.mxu1 %vm334_vm1, %v2940_v63  ;;  %3417 = vmatprep.mubr.msk.f32.mxu0 %vm334_vm1, %v2975_v2  ;;  %v2950_v63 = vld [vmem:[%s3845_s10 + $0x248] sm:$0xff]  ;;  %v2985_v2 = vld [vmem:[%s3845_s10 + $0x330] sm:$0xff] }
  0x54   : > { %3391 = vmatprep.mubr.msk.f32.mxu1 %vm334_vm1, %v2941_v1  ;;  %v2951_v1 = vld [vmem:[%s3845_s10 + $0x258] sm:$0xff] }
  0x56   : > { %3418 = vmatmul.mubr.msk.f32.gmra.mxu0 %vm334_vm1, %v2976_v5  ;;  %v2986_v5 = vld [vmem:[%s3845_s10 + $0x338] sm:$0xff] }
  0x57   : > { %3392 = vmatmul.mubr.msk.f32.gmra.mxu1 %vm334_vm1, %v2942_v3  ;;  %3420 = vmatprep.mubr.msk.f32.mxu0 %vm334_vm1, %v2977_v10  ;;  %v2952_v3 = vld [vmem:[%s3845_s10 + $0x260] sm:$0xff] }
  0x58   : > { %3394 = vmatprep.mubr.msk.f32.mxu1 %vm334_vm1, %v2943_v9  ;;  %v3005_v9 = vld [vmem:[%s3845_s10 + $0x1b1] sm:$0xff]  ;;  %v3006_v10 = vld [vmem:[%s3845_s10 + $0x1b9] sm:$0xff] }
  0x5a   : > { %3421 = vmatmul.mubr.msk.f32.gmra.mxu0 %vm334_vm1, %v2978_v22  ;;  %v3008_v22 = vld [vmem:[%s3845_s10 + $0x1d1] sm:$0xff] }
  0x5b   : > { %3395 = vmatmul.mubr.msk.f32.gmra.mxu1 %vm334_vm1, %v2944_v21  ;;  %3423 = vmatprep.mubr.msk.f32.mxu0 %vm334_vm1, %v2979_v24  ;;  %v3007_v21 = vld [vmem:[%s3845_s10 + $0x1c9] sm:$0xff] }
  0x5c   : > { %3397 = vmatprep.mubr.msk.f32.mxu1 %vm334_vm1, %v2945_v23  ;;  %v3054_v23 = vld [vmem:[%s3845_s10 + $0xc8] sm:$0xff] }
  0x5e   : > { %3424 = vmatmul.mubr.msk.f32.gmra.mxu0 %vm334_vm1, %v2980_v28 }
  0x5f   : > { %3398 = vmatmul.mubr.msk.f32.gmra.mxu1 %vm334_vm1, %v2946_v27  ;;  %3426 = vmatprep.mubr.msk.f32.mxu0 %vm334_vm1, %v2981_v56 }
  0x60   : > { %3400 = vmatprep.mubr.msk.f32.mxu1 %vm334_vm1, %v2947_v55 }
  0x62   : > { %3427 = vmatmul.mubr.msk.f32.gmra.mxu0 %vm334_vm1, %v2982_v58 }
  0x63   : > { %3401 = vmatmul.mubr.msk.f32.gmra.mxu1 %vm334_vm1, %v2948_v57  ;;  %3429 = vmatprep.mubr.msk.f32.mxu0 %vm334_vm1, %v2983_v60 }
  0x64   : > { %3403 = vmatprep.mubr.msk.f32.mxu1 %vm334_vm1, %v2949_v59 }
  0x66   : > { %3430 = vmatmul.mubr.msk.f32.gmra.mxu0 %vm334_vm1, %v2984_v0 }
  0x67   : > { %3404 = vmatmul.mubr.msk.f32.gmra.mxu1 %vm334_vm1, %v2950_v63  ;;  %3432 = vmatprep.mubr.msk.f32.mxu0 %vm334_vm1, %v2985_v2 }
  0x68   : > { %3406 = vmatprep.mubr.msk.f32.mxu1 %vm334_vm1, %v2951_v1 }
  0x6a   : > { %3433 = vmatmul.mubr.msk.f32.gmra.mxu0 %vm334_vm1, %v2986_v5 }
  0x6b   : > { %3407 = vmatmul.mubr.msk.f32.gmra.mxu1 %vm334_vm1, %v2952_v3  ;;  %3463 = vmatprep.mubr.msk.f32.mxu0 %vm334_vm1, %v3938_v25  ;;  %v3009_v25 = vld [vmem:[%s3845_s10 + $0x1e1] sm:$0xff] }
  0x6c   : > { %3437 = vmatprep.mubr.msk.f32.mxu1 %vm334_vm1, %v3005_v9 }
  0x6e   : > { %3464 = vmatmul.mubr.msk.f32.vlgmr.msra.gmra.mxu0 %vm334_vm1, %v3958_v29  ;;  %v3010_v29 = vld [vmem:[%s3845_s10 + $0x1e9] sm:$0xff] }
  0x6f   : > { %3438 = vmatmul.mubr.msk.f32.vlgmr.msra.gmra.mxu1 %vm334_vm1, %v3006_v10  ;;  %3514 = vmatpush3.msk.msra.mxu0 %vm383_vm0, %v4113_v62  ;;  %v3053_v62 = vld [vmem:[%s3845_s10 + $0xc0] sm:$0xff] }
  0x70   : > { %3488 = vmatpush3.msk.msra.mxu1 %vm383_vm0, %v4108_v61  ;;  %3440 = vmatprep.mubr.msk.f32.mxu1 %vm334_vm1, %v3007_v21  ;;  %v3011_v61 = vld [vmem:[%s3845_s10 + $0x1f9] sm:$0xff] }
  0x71   : > { %3466 = vmatprep.mubr.msk.f32.mxu0 %vm334_vm1, %v3968_v31  ;;  %v3012_v31 = vld [vmem:[%s3845_s10 + $0x201] sm:$0xff] }
  0x72   : > { %3467 = vmatmul.mubr.msk.f32.gmra.mxu0 %vm334_vm1, %v3986_v33  ;;  %v3013_v33 = vld [vmem:[%s3845_s10 + $0x211] sm:$0xff] }
  0x73   : > { %3441 = vmatmul.mubr.msk.f32.gmra.mxu1 %vm334_vm1, %v3008_v22  ;;  %3469 = vmatprep.mubr.msk.f32.mxu0 %vm334_vm1, %v3992_v35  ;;  %v3014_v35 = vld [vmem:[%s3845_s10 + $0x219] sm:$0xff] }
  0x74   : > { %3443 = vmatprep.mubr.msk.f32.mxu1 %vm334_vm1, %v3009_v25 }
  0x76   : > { %3470 = vmatmul.mubr.msk.f32.gmra.mxu0 %vm334_vm1, %v4006_v37  ;;  %v3015_v37 = vld [vmem:[%s3845_s10 + $0x229] sm:$0xff] }
  0x77   : > { %3444 = vmatmul.mubr.msk.f32.gmra.mxu1 %vm334_vm1, %v3010_v29  ;;  %3472 = vmatprep.mubr.msk.f32.mxu0 %vm334_vm1, %v4012_v39  ;;  %v3016_v39 = vld [vmem:[%s3845_s10 + $0x231] sm:$0xff] }
  0x78   : > { %3446 = vmatprep.mubr.msk.f32.mxu1 %vm334_vm1, %v3011_v61 }
  0x7a   : > { %3473 = vmatmul.mubr.msk.f32.gmra.mxu0 %vm334_vm1, %v4026_v41  ;;  %v3017_v41 = vld [vmem:[%s3845_s10 + $0x241] sm:$0xff] }
  0x7b   : > { %3447 = vmatmul.mubr.msk.f32.gmra.mxu1 %vm334_vm1, %v3012_v31  ;;  %3475 = vmatprep.mubr.msk.f32.mxu0 %vm334_vm1, %v4032_v43  ;;  %v3018_v43 = vld [vmem:[%s3845_s10 + $0x249] sm:$0xff] }
  0x7c   : > { %3449 = vmatprep.mubr.msk.f32.mxu1 %vm334_vm1, %v3013_v33 }
  0x7e   : > { %3476 = vmatmul.mubr.msk.f32.gmra.mxu0 %vm334_vm1, %v4046_v45  ;;  %v3019_v45 = vld [vmem:[%s3845_s10 + $0x259] sm:$0xff] }
  0x7f   : > { %3450 = vmatmul.mubr.msk.f32.gmra.mxu1 %vm334_vm1, %v3014_v35  ;;  %3478 = vmatprep.mubr.msk.f32.mxu0 %vm334_vm1, %v4052_v47  ;;  %v3020_v47 = vld [vmem:[%s3845_s10 + $0x261] sm:$0xff] }
  0x80   : > { %3452 = vmatprep.mubr.msk.f32.mxu1 %vm334_vm1, %v3015_v37 }
  0x82   : > { %3479 = vmatmul.mubr.msk.f32.gmra.mxu0 %vm334_vm1, %v4066_v49 }
  0x83   : > { %3453 = vmatmul.mubr.msk.f32.gmra.mxu1 %vm334_vm1, %v3016_v39  ;;  %3481 = vmatprep.mubr.msk.f32.mxu0 %vm334_vm1, %v4072_v51 }
  0x84   : > { %3455 = vmatprep.mubr.msk.f32.mxu1 %vm334_vm1, %v3017_v41 }
  0x86   : > { %3482 = vmatmul.mubr.msk.f32.gmra.mxu0 %vm334_vm1, %v4086_v53 }
  0x87   : > { %3456 = vmatmul.mubr.msk.f32.gmra.mxu1 %vm334_vm1, %v3018_v43  ;;  %3484 = vmatprep.mubr.msk.f32.mxu0 %vm334_vm1, %v3053_v62 }
  0x88   : > { %3458 = vmatprep.mubr.msk.f32.mxu1 %vm334_vm1, %v3019_v45 }
  0x8a   : > { %3485 = vmatmul.mubr.msk.f32.gmra.mxu0 %vm334_vm1, %v3054_v23 }
  0x8b   : > { %3459 = vmatmul.mubr.msk.f32.gmra.mxu1 %vm334_vm1, %v3020_v47  ;;  %3515 = vmatprep.mubr.msk.f32.mxu0 %vm334_vm1, %v3941_v26 }
  0x8c   : > { %3489 = vmatprep.mubr.msk.f32.mxu1 %vm334_vm1, %v3859_v7  ;;  %v3088_v7 = vld [vmem:[%s3845_s10 + $0x1a0] sm:$0xff] }
  0x8e   : > { %3516 = vmatmul.mubr.msk.f32.vlgmr.msra.gmra.mxu0 %vm334_vm1, %v3961_v30 }
  0x8f   : > { %3490 = vmatmul.mubr.msk.f32.vlgmr.msra.gmra.mxu1 %vm334_vm1, %v3876_v11  ;;  %3518 = vmatprep.mubr.msk.f32.mxu0 %vm334_vm1, %v3971_v32 }
  0x90   : > { %3492 = vmatprep.mubr.msk.f32.mxu1 %vm334_vm1, %v3886_v13 }
  0x92   : > { %3519 = vmatmul.mubr.msk.f32.gmra.mxu0 %vm334_vm1, %v3989_v34 }
  0x93   : > { %3493 = vmatmul.mubr.msk.f32.gmra.mxu1 %vm334_vm1, %v3902_v15  ;;  %3521 = vmatprep.mubr.msk.f32.mxu0 %vm334_vm1, %v3995_v36 }
  0x94   : > { %3495 = vmatprep.mubr.msk.f32.mxu1 %vm334_vm1, %v3908_v17 }
  0x96   : > { %3522 = vmatmul.mubr.msk.f32.gmra.mxu0 %vm334_vm1, %v4009_v38 }
  0x97   : > { %3496 = vmatmul.mubr.msk.f32.gmra.mxu1 %vm334_vm1, %v3922_v19  ;;  %3524 = vmatprep.mubr.msk.f32.mxu0 %vm334_vm1, %v4015_v40 }
  0x98   : > { %3498 = vmatprep.mubr.msk.f32.mxu1 %vm334_vm1, %v3849_v4  ;;  %v3087_v4 = vld [vmem:[%s3845_s10 + $0x198] sm:$0xff] }
  0x9a   : > { %3525 = vmatmul.mubr.msk.f32.gmra.mxu0 %vm334_vm1, %v4029_v42 }
  0x9b   : > { %3499 = vmatmul.mubr.msk.f32.gmra.mxu1 %vm334_vm1, %v3856_v6  ;;  %3527 = vmatprep.mubr.msk.f32.mxu0 %vm334_vm1, %v4035_v44  ;;  %v3121_v6 = vld [vmem:[%s3845_s10 + $0xc1] sm:$0xff] }
  0x9c   : > { %3501 = vmatprep.mubr.msk.f32.mxu1 %vm334_vm1, %v3862_v8  ;;  %v3122_v8 = vld [vmem:[%s3845_s10 + $0xc9] sm:$0xff] }
  0x9e   : > { %3528 = vmatmul.mubr.msk.f32.gmra.mxu0 %vm334_vm1, %v4049_v46 }
  0x9f   : > { %3502 = vmatmul.mubr.msk.f32.gmra.mxu1 %vm334_vm1, %v3879_v12  ;;  %3530 = vmatprep.mubr.msk.f32.mxu0 %vm334_vm1, %v4055_v48 }
  0xa0   : > { %3504 = vmatprep.mubr.msk.f32.mxu1 %vm334_vm1, %v3889_v14 }
  0xa2   : > { %3531 = vmatmul.mubr.msk.f32.gmra.mxu0 %vm334_vm1, %v4069_v50 }
  0xa3   : > { %3505 = vmatmul.mubr.msk.f32.gmra.mxu1 %vm334_vm1, %v3905_v16  ;;  %3533 = vmatprep.mubr.msk.f32.mxu0 %vm334_vm1, %v4075_v52 }
  0xa4   : > { %3507 = vmatprep.mubr.msk.f32.mxu1 %vm334_vm1, %v3911_v18 }
  0xa6   : > { %3534 = vmatmul.mubr.msk.f32.gmra.mxu0 %vm334_vm1, %v4089_v54 }
  0xa7   : > { %3508 = vmatmul.mubr.msk.f32.gmra.mxu1 %vm334_vm1, %v3925_v20  ;;  %3536 = vmatprep.mubr.msk.f32.mxu0 %vm334_vm1, %v3121_v6 }
  0xa8   : > { %3510 = vmatprep.mubr.msk.f32.mxu1 %vm334_vm1, %v3087_v4 }
  0xaa   : > { %3537 = vmatmul.mubr.msk.f32.gmra.mxu0 %vm334_vm1, %v3122_v8 }
  0xab   : > { %3511 = vmatmul.mubr.msk.f32.gmra.mxu1 %vm334_vm1, %v3088_v7 }
  0xde   : > { %v3309_v11 = vpop.f32.mrf.mxu0 }
  0xdf   : > { %v3321_v12 = vpop.f32.mrf.mxu1 }
  0xe0   : > { %v453_v13 = vpop.f32.mrf.mxu0 }
  0xe1   : > { %v493_v14 = vpop.f32.mrf.mxu1 }
  0xe2   : > { %v3312_v15 = vpop.f32.mrf.mxu0 }
  0xe3   : > { %v3324_v16 = vpop.f32.mrf.mxu1 }
  0xe4   : > { %v463_v17 = vpop.f32.mrf.mxu0 }
  0xe5   : > { %v503_v18 = vpop.f32.mrf.mxu1 }
  0xe6   : > { %v3315_v19 = vpop.f32.mrf.mxu0 }
  0xe7   : > { %v3327_v20 = vpop.f32.mrf.mxu1 }
  0xe8   : > { %v473_v26 = vpop.f32.mrf.mxu0 }
  0xe9   : > { %v513_v30 = vpop.f32.mrf.mxu1 }
  0xea   : > { %v3318_v32 = vpop.f32.mrf.mxu0 }
  0xeb   : > { %v3330_v34 = vpop.f32.mrf.mxu1 }
  0xec   : > { %v483_v36 = vpop.f32.mrf.mxu0 }
  0xed   : > { %v4309_v38 = vpop.f32.mrf.mxu1 }
  0xee   : > { %v3361_v42 = vpop.f32.mrf.mxu0 }
  0xef   : > { %v3335_v40 = vpop.f32.mrf.mxu1 }
  0xf0   : > { %v655_v44 = vadd.f32 %v3335_v40, %v3309_v11  ;;  %v863_v48 = vpop.f32.mrf.mxu0 }
  0xf1   : > { %v649_v46 = vpop.f32.mrf.mxu1 }
  0xf2   : > { %v943_v49 = vadd.f32 %v3361_v42, %v655_v44  ;;  %v650_v50 = vadd.f32 %v649_v46, %v453_v13  ;;  %v3364_v52 = vpop.f32.mrf.mxu0 }
  0xf3   : > { %v3338_v51 = vpop.f32.mrf.mxu1 }
  0xf4   : > { %v942_v53 = vadd.f32 %v863_v48, %v650_v50  ;;  %v665_v54 = vadd.f32 %v3338_v51, %v3312_v15  ;;  %v873_v27 = vpop.f32.mrf.mxu0 }
  0xf5   : > { %v659_v24 = vpop.f32.mrf.mxu1 }
  0xf6   : > { %v945_v28 = vadd.f32 %v3364_v52, %v665_v54  ;;  %v660_v55 = vadd.f32 %v659_v24, %v463_v17  ;;  %v3367_v57 = vpop.f32.mrf.mxu0 }
  0xf7   : > { %v3341_v56 = vpop.f32.mrf.mxu1 }
  0xf8   : > { %v944_v58 = vadd.f32 %v873_v27, %v660_v55  ;;  %v675_v59 = vadd.f32 %v3341_v56, %v3315_v19  ;;  %v883_v63 = vpop.f32.mrf.mxu0 }
  0xf9   : > { %v669_v60 = vpop.f32.mrf.mxu1 }
  0xfa   : > { %v947_v0 = vadd.f32 %v3367_v57, %v675_v59  ;;  %v670_v1 = vadd.f32 %v669_v60, %v473_v26  ;;  %v3370_v3 = vpop.f32.mrf.mxu0 }
  0xfb   : > { %v3344_v2 = vpop.f32.mrf.mxu1 }
  0xfc   : > { %v946_v5 = vadd.f32 %v883_v63, %v670_v1  ;;  %v685_v9 = vadd.f32 %v3344_v2, %v3318_v32  ;;  %v893_v21 = vpop.f32.mrf.mxu0 }
  0xfd   : > { %v679_v10 = vpop.f32.mrf.mxu1 }
  0xfe   : > { %v949_v22 = vadd.f32 %v3370_v3, %v685_v9  ;;  %v680_v25 = vadd.f32 %v679_v10, %v483_v36  ;;  %v3373_v61 = vpop.f32.mrf.mxu0 }
  0xff   : > { %v3347_v29 = vpop.f32.mrf.mxu1 }
 0x100   : > { %v948_v31 = vadd.f32 %v893_v21, %v680_v25  ;;  %v695_v33 = vadd.f32 %v3347_v29, %v3321_v12  ;;  %v903_v37 = vpop.f32.mrf.mxu0 }
 0x101   : > { %v689_v35 = vpop.f32.mrf.mxu1 }
 0x102   : > { %v951_v39 = vadd.f32 %v3373_v61, %v695_v33  ;;  %v690_v41 = vadd.f32 %v689_v35, %v493_v14  ;;  %v3376_v45 = vpop.f32.mrf.mxu0 }
 0x103   : > { %v3350_v43 = vpop.f32.mrf.mxu1 }
 0x104   : > { %v950_v62 = vadd.f32 %v903_v37, %v690_v41  ;;  %v705_v47 = vadd.f32 %v3350_v43, %v3324_v16  ;;  %v913_v4 = vpop.f32.mrf.mxu0 }
 0x105   : > { %v699_v23 = vpop.f32.mrf.mxu1 }
 0x106   : > { %v953_v6 = vadd.f32 %v3376_v45, %v705_v47  ;;  %v700_v7 = vadd.f32 %v699_v23, %v503_v18  ;;  %v3379_v11 = vpop.f32.mrf.mxu0 }
 0x107   : > { %v3353_v8 = vpop.f32.mrf.mxu1 }
 0x108   : > { %v952_v13 = vadd.f32 %v913_v4, %v700_v7  ;;  %v715_v15 = vadd.f32 %v3353_v8, %v3327_v20  ;;  %v923_v19 = vpop.f32.mrf.mxu0 }
 0x109   : > { %v709_v17 = vpop.f32.mrf.mxu1 }
 0x10a   : > { %v4312_v26 = vadd.f32 %v3379_v11, %v715_v15  ;;  %v710_v12 = vadd.f32 %v709_v17, %v513_v30  ;;  %v3382_v36 = vpop.f32.mrf.mxu0 }
 0x10b   : > { %v3356_v32 = vpop.f32.mrf.mxu1 }
 0x10c   : > { %v4314_v14 = vadd.f32 %v923_v19, %v710_v12  ;;  %v725_v40 = vadd.f32 %v3356_v32, %v3330_v34  ;;  %v933_v16 = vpop.f32.mrf.mxu0 }
 0x10d   : > { %v719_v42 = vpop.f32.mrf.mxu1 }
 0x10e   : > { %v4316_v44 = vadd.f32 %v3382_v36, %v725_v40  ;;  %v720_v18 = vadd.f32 %v719_v42, %v4309_v38  ;;  %v3413_v48 = vpop.f32.mrf.mxu0 }
 0x10f   : > { %v3387_v46 = vpop.f32.mrf.mxu1 }
 0x110   : > { %v4319_v50 = vadd.f32 %v933_v16, %v720_v18  ;;  %v1175_v20 = vadd.f32 %v3387_v46, %v943_v49  ;;  %v1327_v52 = vpop.f32.mrf.mxu0 }
 0x111   : > { %v1095_v51 = vpop.f32.mrf.mxu1 }
 0x112   : > { %v4321_v54 = vadd.f32 %v3413_v48, %v1175_v20  ;;  %v1174_v30 = vadd.f32 %v1095_v51, %v942_v53  ;;  %v3416_v27 = vpop.f32.mrf.mxu0 }
 0x113   : > { %v3390_v24 = vpop.f32.mrf.mxu1 }
 0x114   : > { %v4323_v55 = vadd.f32 %v1327_v52, %v1174_v30  ;;  %v1177_v34 = vadd.f32 %v3390_v24, %v945_v28  ;;  %v1337_v57 = vpop.f32.mrf.mxu0 }
 0x115   : > { %v1105_v56 = vpop.f32.mrf.mxu1 }
 0x116   : > { %v4325_v59 = vadd.f32 %v3416_v27, %v1177_v34  ;;  %v1176_v38 = vadd.f32 %v1105_v56, %v944_v58  ;;  %v3419_v63 = vpop.f32.mrf.mxu0 }
 0x117   : > { %v3393_v60 = vpop.f32.mrf.mxu1 }
 0x118   : > { %v4327_v1 = vadd.f32 %v1337_v57, %v1176_v38  ;;  %v1179_v49 = vadd.f32 %v3393_v60, %v947_v0  ;;  %v1347_v3 = vpop.f32.mrf.mxu0 }
 0x119   : > { %v1115_v2 = vpop.f32.mrf.mxu1 }
 0x11a   : > { %v4329_v9 = vadd.f32 %v3419_v63, %v1179_v49  ;;  %v1178_v53 = vadd.f32 %v1115_v2, %v946_v5  ;;  %v3422_v21 = vpop.f32.mrf.mxu0 }
 0x11b   : > { %v3396_v10 = vpop.f32.mrf.mxu1 }
 0x11c   : > { %v4331_v25 = vadd.f32 %v1347_v3, %v1178_v53  ;;  %v1181_v28 = vadd.f32 %v3396_v10, %v949_v22  ;;  %v1357_v61 = vpop.f32.mrf.mxu0 }
 0x11d   : > { %v1125_v29 = vpop.f32.mrf.mxu1 }
 0x11e   : > { %v4333_v33 = vadd.f32 %v3422_v21, %v1181_v28  ;;  %v1180_v58 = vadd.f32 %v1125_v29, %v948_v31  ;;  %v3425_v37 = vpop.f32.mrf.mxu0 }
 0x11f   : > { %v3399_v35 = vpop.f32.mrf.mxu1 }
 0x120   : > { %v4335_v41 = vadd.f32 %v1357_v61, %v1180_v58  ;;  %v1183_v0 = vadd.f32 %v3399_v35, %v951_v39  ;;  %v1367_v45 = vpop.f32.mrf.mxu0 }
 0x121   : > { %v1135_v43 = vpop.f32.mrf.mxu1 }
 0x122   : > { %v4337_v47 = vadd.f32 %v3425_v37, %v1183_v0  ;;  %v1182_v5 = vadd.f32 %v1135_v43, %v950_v62  ;;  %v3428_v4 = vpop.f32.mrf.mxu0 }
 0x123   : > { %v3402_v23 = vpop.f32.mrf.mxu1 }
 0x124   : > { %v4339_v7 = vadd.f32 %v1367_v45, %v1182_v5  ;;  %v1185_v22 = vadd.f32 %v3402_v23, %v953_v6  ;;  %v1377_v11 = vpop.f32.mrf.mxu0 }
 0x125   : > { %v1145_v8 = vpop.f32.mrf.mxu1 }
 0x126   : > { %v4341_v15 = vadd.f32 %v3428_v4, %v1185_v22  ;;  %v1184_v31 = vadd.f32 %v1145_v8, %v952_v13  ;;  %v4345_v19 = vpop.f32.mrf.mxu0 }
 0x127   : > { %v4343_v17 = vpop.f32.mrf.mxu1 }
 0x128   : > { %v4347_v39 = vadd.f32 %v1377_v11, %v1184_v31  ;;  %v4351_v32 = vpop.f32.mrf.mxu0 }
 0x129   : > { %v4349_v12 = vpop.f32.mrf.mxu1 }
 0x12a   : > { %v4355_v36 = vpop.f32.mrf.mxu0 }
 0x12b   : > { %v4353_v62 = vpop.f32.mrf.mxu1 }
 0x12c   : > { %v4359_v40 = vpop.f32.mrf.mxu0 }
 0x12d   : > { %v4357_v6 = vpop.f32.mrf.mxu1 }
 0x12e   : > { %v3465_v13 = vpop.f32.mrf.mxu0 }
 0x12f   : > { %v3439_v42 = vpop.f32.mrf.mxu1 }
 0x130   : > { %v1790_v18 = vpop.f32.mrf.mxu0  ;;  %v1637_v35 = vadd.f32 %v3439_v42, %v4321_v54  ;;  %v4399_v42 = vld [vmem:[%s4754_s2] ss:$0 sm:$0xff] }
 0x131   : > { %v1557_v16 = vpop.f32.mrf.mxu1 }
 0x132   : > { %v3468_v48 = vpop.f32.mrf.mxu0  ;;  %v1636_v43 = vadd.f32 %v1557_v16, %v4323_v55  ;;  %v1870_v23 = vadd.f32 %v3465_v13, %v1637_v35 }
 0x133   : > { %v3442_v46 = vpop.f32.mrf.mxu1 }
 0x134   : > { %v1800_v51 = vpop.f32.mrf.mxu0  ;;  %v1639_v4 = vadd.f32 %v3442_v46, %v4325_v59  ;;  %v1869_v11 = vadd.f32 %v1790_v18, %v1636_v43 }
 0x135   : > { %v1567_v20 = vpop.f32.mrf.mxu1 }
 0x136   : > { %v3471_v30 = vpop.f32.mrf.mxu0  ;;  %v1638_v31 = vadd.f32 %v1567_v20, %v4327_v1 }
 0x137   : > { %v3445_v52 = vpop.f32.mrf.mxu1 }
 0x138   : > { %v1810_v27 = vpop.f32.mrf.mxu0  ;;  %v1641_v54 = vadd.f32 %v3445_v52, %v4329_v9  ;;  %v1871_v18 = vadd.f32 %v1800_v51, %v1638_v31 }
 0x139   : > { %v1577_v24 = vpop.f32.mrf.mxu1 }
 0x13a   : > { %v3474_v56 = vpop.f32.mrf.mxu0  ;;  %v1640_v59 = vadd.f32 %v1577_v24, %v4331_v25  ;;  %v1874_v52 = vadd.f32 %v3471_v30, %v1641_v54 }
 0x13b   : > { %v3448_v34 = vpop.f32.mrf.mxu1 }
 0x13c   : > { %v4361_v38 = vpop.f32.mrf.mxu0 }
 0x13d   : > { %v1587_v57 = vpop.f32.mrf.mxu1 }
 0x13e   : > { %v4363_v63 = vpop.f32.mrf.mxu0  ;;  %v1642_v51 = vadd.f32 %v1587_v57, %v4335_v41 }
 0x13f   : > { %v3451_v60 = vpop.f32.mrf.mxu1 }
 0x140   : > { %v4365_v2 = vpop.f32.mrf.mxu0  ;;  %v1645_v30 = vadd.f32 %v3451_v60, %v4337_v47 }
 0x141   : > { %v1597_v49 = vpop.f32.mrf.mxu1 }
 0x142   : > { %v4369_v53 = vpop.f32.mrf.mxu0  ;;  %v1644_v41 = vadd.f32 %v1597_v49, %v4339_v7 }
 0x143   : > { %v4367_v3 = vpop.f32.mrf.mxu1 }
 0x144   : > { %v4373_v21 = vpop.f32.mrf.mxu0 }
 0x145   : > { %v4371_v10 = vpop.f32.mrf.mxu1 }
 0x146   : > { %v4377_v29 = vpop.f32.mrf.mxu0 }
 0x147   : > { %v4375_v28 = vpop.f32.mrf.mxu1 }
 0x148   : > { %v4381_v58 = vpop.f32.mrf.mxu0 }
 0x149   : > { %v4379_v61 = vpop.f32.mrf.mxu1  ;;  %4761 = vst [vmem:[#allocation6_spill] sm:$0xff] %v4381_v58 }
 0x14a   : > { %v4386_v0 = vpop.f32.mrf.mxu0 }
 0x14b   : > { %v4384_v37 = vpop.f32.mrf.mxu1  ;;  %4762 = vst [vmem:[#allocation7_spill] sm:$0xff] %v4386_v0  ;;  %v1872_v0 = vadd.f32 %v3468_v48, %v1639_v4  ;;  %v1873_v4 = vadd.f32 %v1810_v27, %v1640_v59  ;;  %v1187_v27 = vadd.f32 %v4343_v17, %v4312_v26  ;;  %v1647_v26 = vadd.f32 %v4367_v3, %v4341_v15 }
 0x14c   : > { %v4391_v5 = vpop.f32.mrf.mxu0 }
 0x14d   : > { %v4389_v45 = vpop.f32.mrf.mxu1  ;;  %4764 = vst [vmem:[#allocation9_spill] sm:$0xff] %v4391_v5  ;;  %v1419_v49 = vadd.f32 %v4345_v19, %v1187_v27  ;;  %v1188_v19 = vadd.f32 %v4357_v6, %v4319_v50 }
 0x14e   : > { %4763 = vst [vmem:[#allocation8_spill] sm:$0xff] %v4389_v45  ;;  %v3517_v8 = vpop.f32.mrf.mxu0 }
 0x14f   : > { %v3491_v22 = vpop.f32.mrf.mxu1 }
 0x150   : > { %v2102_v58 = vadd.f32 %v3491_v22, %v1870_v23  ;;  %v2252_v16 = vpop.f32.mrf.mxu0  ;;  %v1643_v22 = vadd.f32 %v3448_v34, %v4333_v33 }
 0x151   : > { %v2022_v55 = vpop.f32.mrf.mxu1 }
 0x152   : > { %v2332_v5 = vadd.f32 %v3517_v8, %v2102_v58  ;;  %v2101_v13 = vadd.f32 %v2022_v55, %v1869_v11  ;;  %v3520_v35 = vpop.f32.mrf.mxu0  ;;  %v1876_v33 = vadd.f32 %v3474_v56, %v1643_v22  ;;  %v1186_v56 = vadd.f32 %v4349_v12, %v4314_v14 }
 0x153   : > { %v3494_v46 = vpop.f32.mrf.mxu1 }
 0x154   : > { %v4403_v1 = vadd.f32 %v4399_v42, %v2332_v5  ;;  %v2331_v20 = vadd.f32 %v2252_v16, %v2101_v13  ;;  %v2104_v9 = vadd.f32 %v3494_v46, %v1872_v0  ;;  %v2262_v23 = vpop.f32.mrf.mxu0  ;;  %v1875_v13 = vadd.f32 %v4361_v38, %v1642_v51 }
 0x155   : > { %v2032_v43 = vpop.f32.mrf.mxu1  ;;  %v1878_v46 = vadd.f32 %v4363_v63, %v1645_v30  ;;  %v1646_v63 = vadd.f32 %v4371_v10, %v4347_v39 }
 0x156   : > { %v4407_v45 = vadd.f32 %v4399_v42, %v2331_v20  ;;  %v2334_v48 = vadd.f32 %v3520_v35, %v2104_v9  ;;  %v2103_v58 = vadd.f32 %v2032_v43, %v1871_v18  ;;  %v3523_v24 = vpop.f32.mrf.mxu0  ;;  %v1189_v20 = vadd.f32 %v4353_v62, %v4316_v44 }
 0x157   : > { %v3497_v25 = vpop.f32.mrf.mxu1  ;;  %v1877_v9 = vadd.f32 %v4365_v2, %v1644_v41  ;;  %v1418_v43 = vadd.f32 %v4351_v32, %v1186_v56  ;;  %v1880_v2 = vadd.f32 %v4369_v53, %v1647_v26  ;;  %v1420_v53 = vadd.f32 %v4359_v40, %v1188_v19 }
 0x158   : > { %v4411_v5 = vadd.f32 %v4399_v42, %v2334_v48  ;;  %v2333_v8 = vadd.f32 %v2262_v23, %v2103_v58  ;;  %v2106_v0 = vadd.f32 %v3497_v25, %v1874_v52  ;;  %v2272_v31 = vpop.f32.mrf.mxu0  ;;  %v1649_v23 = vadd.f32 %v4375_v28, %v1419_v49 }
 0x159   : > { %v2042_v11 = vpop.f32.mrf.mxu1  ;;  %v1421_v48 = vadd.f32 %v4355_v36, %v1189_v20  ;;  %v1648_v58 = vadd.f32 %v4379_v61, %v1418_v43  ;;  %v1879_v25 = vadd.f32 %v4373_v21, %v1646_v63  ;;  %v3718_v43 = vmov (%p2370_p13), 0.0  }
 0x15a   : > { %v4415_v34 = vadd.f32 %v4399_v42, %v2333_v8  ;;  %v2336_v54 = vadd.f32 %v3523_v24, %v2106_v0  ;;  %v2105_v55 = vadd.f32 %v2042_v11, %v1873_v4  ;;  %v3526_v16 = vpop.f32.mrf.mxu0  ;;  %v1882_v24 = vadd.f32 %v4377_v29, %v1649_v23  ;;  %v4765_v11 = vld [vmem:[#allocation6_spill] sm:$0xff]  ;;  %2376 = vst [vmem:[#allocation2] sm:$0x3] (%p2370_p13), %v3718_v43 }
 0x15b   : > { %v3500_v57 = vpop.f32.mrf.mxu1  ;;  %v1651_v0 = vadd.f32 %v4384_v37, %v1421_v48  ;;  %v1881_v21 = vadd.f32 %v4765_v11, %v1648_v58 }
 0x15c   : > { %v4422_v59 = vadd.f32 %v4399_v42, %v2336_v54  ;;  %v2335_v47 = vadd.f32 %v2272_v31, %v2105_v55  ;;  %v2108_v60 = vadd.f32 %v3500_v57, %v1876_v33  ;;  %v2282_v18 = vpop.f32.mrf.mxu0  ;;  %v4766_v54 = vld [vmem:[#allocation8_spill] sm:$0xff] }
 0x15d   : > { %v2052_v35 = vpop.f32.mrf.mxu1  ;;  %v1650_v55 = vadd.f32 %v4766_v54, %v1420_v53 }
 0x15e   : > { %v4430_v7 = vadd.f32 %v4399_v42, %v2335_v47  ;;  %v2338_v17 = vadd.f32 %v3526_v16, %v2108_v60  ;;  %v2107_v38 = vadd.f32 %v2052_v35, %v1875_v13  ;;  %v3529_v12 = vpop.f32.mrf.mxu0  ;;  %v4767_v16 = vld [vmem:[#allocation7_spill] sm:$0xff]  ;;  %v4768_v35 = vld [vmem:[#allocation9_spill] sm:$0xff] }
 0x15f   : > { %v3503_v14 = vpop.f32.mrf.mxu1  ;;  %v1884_v37 = vadd.f32 %v4767_v16, %v1651_v0 }
 0x160   : > { %v4439_v52 = vadd.f32 %v4399_v42, %v2338_v17  ;;  %v2337_v15 = vadd.f32 %v2282_v18, %v2107_v38  ;;  %v2110_v3 = vadd.f32 %v3503_v14, %v1878_v46  ;;  %v2292_v62 = vpop.f32.mrf.mxu0  ;;  %v1883_v18 = vadd.f32 %v4768_v35, %v1650_v55 }
 0x161   : > { %v2062_v44 = vpop.f32.mrf.mxu1 }
 0x162   : > { %v4447_v22 = vadd.f32 %v4399_v42, %v2337_v15  ;;  %v2340_v39 = vadd.f32 %v3529_v12, %v2110_v3  ;;  %v2109_v10 = vadd.f32 %v2062_v44, %v1877_v9  ;;  %v3532_v32 = vpop.f32.mrf.mxu0 }
 0x163   : > { %v3506_v4 = vpop.f32.mrf.mxu1 }
 0x164   : > { %v4453_v50 = vadd.f32 %v4399_v42, %v2340_v39  ;;  %v2339_v6 = vadd.f32 %v2292_v62, %v2109_v10  ;;  %v2112_v28 = vadd.f32 %v3506_v4, %v1880_v2  ;;  %v2302_v8 = vpop.f32.mrf.mxu0 }
 0x165   : > { %v2072_v51 = vpop.f32.mrf.mxu1 }
 0x166   : > { %v4459_v36 = vadd.f32 %v4399_v42, %v2339_v6  ;;  %v2342_v61 = vadd.f32 %v3532_v32, %v2112_v28  ;;  %v2111_v30 = vadd.f32 %v2072_v51, %v1879_v25  ;;  %v3535_v33 = vpop.f32.mrf.mxu0 }
 0x167   : > { %v3509_v31 = vpop.f32.mrf.mxu1 }
 0x168   : > { %v4464_v27 = vadd.f32 %v4399_v42, %v2342_v61  ;;  %v2341_v40 = vadd.f32 %v2302_v8, %v2111_v30  ;;  %v2114_v29 = vadd.f32 %v3509_v31, %v1882_v24  ;;  %v2312_v57 = vpop.f32.mrf.mxu0 }
 0x169   : > { %v2082_v41 = vpop.f32.mrf.mxu1 }
 0x16a   : > { %v4468_v13 = vadd.f32 %v4399_v42, %v2341_v40  ;;  %v2344_v47 = vadd.f32 %v3535_v33, %v2114_v29  ;;  %v2113_v60 = vadd.f32 %v2082_v41, %v1881_v21  ;;  %v3538_v46 = vpop.f32.mrf.mxu0 }
 0x16b   : > { %v3512_v56 = vpop.f32.mrf.mxu1 }
 0x16c   : > { %v4472_v26 = vadd.f32 %v4399_v42, %v2344_v47  ;;  %v2343_v17 = vadd.f32 %v2312_v57, %v2113_v60  ;;  %v2116_v38 = vadd.f32 %v3512_v56, %v1884_v37  ;;  %v2322_v12 = vpop.f32.mrf.mxu0 }
 0x16d   : > { %v2092_v49 = vpop.f32.mrf.mxu1 }
 0x16e   : > { %v4475_v20 = vadd.f32 %v4399_v42, %v2343_v17  ;;  %v2346_v9 = vadd.f32 %v3538_v46, %v2116_v38  ;;  %v2115_v14 = vadd.f32 %v2092_v49, %v1883_v18  ;;  %2375 = sbr.rel (!%p2370_p13) target bundleno = 371 (0x173), region = 44 }
 0x170   : > { %v4478_v63 = vadd.f32 %v4399_v42, %v2346_v9  ;;  %v2345_v15 = vadd.f32 %v2322_v12, %v2115_v14 }
 0x172   : > { %v4481_v3 = vadd.f32 %v4399_v42, %v2345_v15 }
 0x173 PF: > { %p3143_p0 = scmp.ne.s32.totalorder %s3700_s21, 0 }
 0x175   : > { %2379 = sbr.rel (%p3143_p0) target bundleno = 409 (0x199), region = 48 }
 0x17a   : > { %v2435_v42 = vadd.f32 %v4415_v34, %v4407_v45  ;;  %v2458_v19 = vmul.f32 %v4407_v45, %v4407_v45  ;;  %v2460_v23 = vmul.f32 %v4415_v34, %v4415_v34  ;;  %v2462_v44 = vmul.f32 %v4430_v7, %v4430_v7  ;;  %2497 = vst [vmem:[%s4484_s17] sm:$0xff] %v4407_v45  ;;  %v2433_v57 = vld [vmem:[#allocation2] sm:$0x1]  ;;  %v2457_v47 = vld [vmem:[#allocation2 + $0x1] sm:$0x1] }
 0x17b   : > { %2498 = vst [vmem:[%s4484_s17 + $0x8] sm:$0xff] %v4403_v1  ;;  %2499 = vst [vmem:[%s4484_s17 + $0x10] sm:$0xff] %v4415_v34  ;;  %v2464_v2 = vmul.f32 %v4447_v22, %v4447_v22  ;;  %v2466_v48 = vmul.f32 %v4459_v36, %v4459_v36  ;;  %v2468_v32 = vmul.f32 %v4468_v13, %v4468_v13 }
 0x17c   : > { %2500 = vst [vmem:[%s4484_s17 + $0x18] sm:$0xff] %v4411_v5  ;;  %2501 = vst [vmem:[%s4484_s17 + $0x20] sm:$0xff] %v4430_v7  ;;  %v2437_v62 = vadd.f32 %v2435_v42, %v4430_v7  ;;  %v2475_v39 = vadd.f32 %v2460_v23, %v2458_v19  ;;  %v2470_v28 = vmul.f32 %v4475_v20, %v4475_v20 }
 0x17d   : > { %2502 = vst [vmem:[%s4484_s17 + $0x28] sm:$0xff] %v4422_v59  ;;  %2503 = vst [vmem:[%s4484_s17 + $0x30] sm:$0xff] %v4447_v22  ;;  %v2472_v51 = vmul.f32 %v4481_v3, %v4481_v3 }
 0x17e   : > { %2504 = vst [vmem:[%s4484_s17 + $0x38] sm:$0xff] %v4439_v52  ;;  %2505 = vst [vmem:[%s4484_s17 + $0x40] sm:$0xff] %v4459_v36  ;;  %v2439_v10 = vadd.f32 %v2437_v62, %v4447_v22  ;;  %v2477_v58 = vadd.f32 %v2475_v39, %v2462_v44 }
 0x17f   : > { %2506 = vst [vmem:[%s4484_s17 + $0x48] sm:$0xff] %v4453_v50  ;;  %2507 = vst [vmem:[%s4484_s17 + $0x50] sm:$0xff] %v4468_v13 }
 0x180   : > { %2508 = vst [vmem:[%s4484_s17 + $0x58] sm:$0xff] %v4464_v27  ;;  %2509 = vst [vmem:[%s4484_s17 + $0x60] sm:$0xff] %v4475_v20  ;;  %v2441_v4 = vadd.f32 %v2439_v10, %v4459_v36  ;;  %v2479_v25 = vadd.f32 %v2477_v58, %v2464_v2 }
 0x181   : > { %2510 = vst [vmem:[%s4484_s17 + $0x68] sm:$0xff] %v4472_v26  ;;  %2511 = vst [vmem:[%s4484_s17 + $0x70] sm:$0xff] %v4481_v3 }
 0x182   : > { %2512 = vst [vmem:[%s4484_s17 + $0x78] sm:$0xff] %v4478_v63  ;;  %v2443_v6 = vadd.f32 %v2441_v4, %v4468_v13  ;;  %v2481_v53 = vadd.f32 %v2479_v25, %v2466_v48 }
 0x184   : > { %v2445_v24 = vadd.f32 %v2443_v6, %v4475_v20  ;;  %v2483_v8 = vadd.f32 %v2481_v53, %v2468_v32 }
 0x186   : > { %v2447_v0 = vadd.f32 %v2445_v24, %v4481_v3  ;;  %v2485_v61 = vadd.f32 %v2483_v8, %v2470_v28 }
 0x188   : > { %v2449_v30 = vrot.slane %v2447_v0, 4  ;;  %v2487_v11 = vadd.f32 %v2485_v61, %v2472_v51 }
 0x18a   : > { %v2450_v21 = vadd.f32 %v2449_v30, %v2447_v0  ;;  %v2489_v31 = vrot.slane %v2487_v11, 4 }
 0x18c   : > { %v2451_v33 = vrot.slane %v2450_v21, 2  ;;  %v2490_v54 = vadd.f32 %v2489_v31, %v2487_v11 }
 0x18e   : > { %v2452_v55 = vadd.f32 %v2451_v33, %v2450_v21  ;;  %v2491_v40 = vrot.slane %v2490_v54, 2 }
 0x190   : > { %v2453_v29 = vrot.slane %v2452_v55, 1  ;;  %v2492_v41 = vadd.f32 %v2491_v40, %v2490_v54 }
 0x192   : > { %v2454_v16 = vadd.f32 %v2453_v29, %v2452_v55  ;;  %v2493_v37 = vrot.slane %v2492_v41, 1 }
 0x194   : > { %v2455_v60 = vadd.f32 %v2454_v16, %v2433_v57  ;;  %v2494_v56 = vadd.f32 %v2493_v37, %v2492_v41 }
 0x196   : > { %2456 = vst [vmem:[#allocation2] sm:$0x1] %v2455_v60  ;;  %v2495_v46 = vadd.f32 %v2494_v56, %v2457_v47 }
 0x198   : > { %2496 = vst [vmem:[#allocation2 + $0x1] sm:$0x1] %v2495_v46 }
 0x199 PF: > { %p3144_p1 = scmp.ne.s32.totalorder %s3700_s21, 1 }
 0x19b   : > { %2516 = sbr.rel (%p3144_p1) target bundleno = 723 (0x2d3), region = 52 }
 0x1a0   : > { %v2517_v35 = vld [vmem:[#allocation2] sm:$0x1]  ;;  %vm2518_vm2 = vcmask 1040384   ;;  %v2532_v18 = vld [vmem:[#allocation2 + $0x1] sm:$0x1]  ;;  %v2591_v30 = vld [vmem:[%s4755_s3 + $0x28] sm:$0xff] }
 0x1a1   : > { %v2519_v17 = vsel %vm2518_vm2, %v2517_v35, 0.0  ;;  %v2533_v38 = vsel %vm2518_vm2, %v2532_v18, 0.0  ;;  %v2592_v11 = vld [vmem:[%s4755_s3 + $0x30] sm:$0xff]  ;;  %v2593_v21 = vld [vmem:[%s4755_s3 + $0x38] sm:$0xff]  ;;  %v2594_v40 = vld [vmem:[%s4755_s3 + $0x40] sm:$0xff] }
 0x1a2   : > { %2520 = vadd.xlane.f32.xlu0 %v2519_v17  ;;  %v2595_v29 = vld [vmem:[%s4755_s3 + $0x48] sm:$0xff]  ;;  %v2596_v41 = vld [vmem:[%s4755_s3 + $0x50] sm:$0xff]  ;;  %v2597_v60 = vld [vmem:[%s4755_s3 + $0x58] sm:$0xff] }
 0x1a3   : > { %v2598_v56 = vld [vmem:[%s4755_s3 + $0x60] sm:$0xff]  ;;  %v2599_v46 = vld [vmem:[%s4755_s3 + $0x68] sm:$0xff] }
 0x1a6   : > { %2534 = vadd.xlane.f32.xlu0 %v2533_v38 }
 0x22b   : > { %v2521_v49 = vpop.xlane.xlu0 %2520 }
 0x22c   : > { %v2522_v9 = vrot.slane %v2521_v49, 4 }
 0x22e   : > { %v2523_v14 = vadd.f32 %v2522_v9, %v2521_v49  ;;  %v2600_v49 = vld [vmem:[%s4755_s3 + $0x70] sm:$0xff]  ;;  %v2601_v9 = vld [vmem:[%s4755_s3 + $0x78] sm:$0xff] }
 0x22f   : > { %v2535_v12 = vpop.xlane.xlu0 %2534 }
 0x230   : > { %v2524_v15 = vrot.slane %v2523_v14, 2  ;;  %v2536_v43 = vrot.slane %v2535_v12, 4 }
 0x232   : > { %v2537_v42 = vadd.f32 %v2536_v43, %v2535_v12  ;;  %v2525_v19 = vadd.f32 %v2524_v15, %v2523_v14  ;;  %v2618_v14 = vld [vmem:[%s4756_s4] sm:$0xff] }
 0x234   : > { %v2538_v23 = vrot.slane %v2537_v42, 2  ;;  %v2526_v44 = vrot.slane %v2525_v19, 1 }
 0x236   : > { %v2539_v62 = vadd.f32 %v2538_v23, %v2537_v42  ;;  %v2527_v2 = vadd.f32 %v2526_v44, %v2525_v19  ;;  %v2619_v19 = vld [vmem:[%s4756_s4 + $0x8] sm:$0xff]  ;;  %v2620_v23 = vld [vmem:[%s4756_s4 + $0x10] sm:$0xff]  ;;  %v2621_v44 = vld [vmem:[%s4756_s4 + $0x18] sm:$0xff] }
 0x238   : > { %3542 = vpush %v2527_v2  ;;  %v2540_v39 = vrot.slane %v2539_v62, 1 }
 0x23a   : > { %v2541_v10 = vadd.f32 %v2540_v39, %v2539_v62 }
 0x23c   : > { %3544 = vpush %v2541_v10 }
 0x269   : > { %s3543_s21 = spop %3542 }
 0x26a   : > { %s2531_s14 = smul.f32 0.001953125, %s3543_s21 }
 0x26c   : > { %s2546_s26 = smul.f32 %s2531_s14, %s2531_s14  ;;  %v2552_v4 = vstv %s2531_s14 }
 0x26d   : > { %s3545_s27 = spop %3544  ;;  %v2553_v32 = vsub.f32 %v4407_v45, %v2552_v4  ;;  %v2554_v25 = vsub.f32 %v4403_v1, %v2552_v4  ;;  %v2555_v6 = vsub.f32 %v4415_v34, %v2552_v4  ;;  %v2556_v28 = vsub.f32 %v4411_v5, %v2552_v4 }
 0x26e   : > { %s2545_s7 = smul.f32 0.001953125, %s3545_s27  ;;  %v2557_v53 = vsub.f32 %v4430_v7, %v2552_v4  ;;  %v2558_v24 = vsub.f32 %v4422_v59, %v2552_v4  ;;  %v2559_v51 = vsub.f32 %v4447_v22, %v2552_v4  ;;  %v2560_v8 = vsub.f32 %v4439_v52, %v2552_v4  ;;  %v2586_v52 = vld [vmem:[%s4755_s3] sm:$0xff] }
 0x26f   : > { %v2561_v0 = vsub.f32 %v4459_v36, %v2552_v4  ;;  %v2562_v61 = vsub.f32 %v4453_v50, %v2552_v4  ;;  %v2563_v45 = vsub.f32 %v4468_v13, %v2552_v4  ;;  %v2564_v1 = vsub.f32 %v4464_v27, %v2552_v4  ;;  %v2587_v50 = vld [vmem:[%s4755_s3 + $0x8] sm:$0xff]  ;;  %v2588_v36 = vld [vmem:[%s4755_s3 + $0x10] sm:$0xff]  ;;  %v2589_v27 = vld [vmem:[%s4755_s3 + $0x18] sm:$0xff] }
 0x270   : > { %s2547_s8 = ssub.f32 %s2545_s7, %s2546_s26  ;;  %v2565_v34 = vsub.f32 %v4475_v20, %v2552_v4  ;;  %v2566_v5 = vsub.f32 %v4472_v26, %v2552_v4  ;;  %v2567_v7 = vsub.f32 %v4481_v3, %v2552_v4  ;;  %v2568_v59 = vsub.f32 %v4478_v63, %v2552_v4  ;;  %v2590_v3 = vld [vmem:[%s4755_s3 + $0x20] sm:$0xff]  ;;  %v2624_v4 = vld [vmem:[%s4756_s4 + $0x30] sm:$0xff] }
 0x272   : > { %s2548_s11 = sadd.f32 1e-05, %s2547_s8 }
 0x274   : > { %v2549_v48 = vstv %s2548_s11 }
 0x275   : > { %3622 = vrsqrt.f32 %v2549_v48  ;;  %v2622_v48 = vld [vmem:[%s4756_s4 + $0x20] sm:$0xff] }
 0x282   : > { %v3623_v58 = vpop.eup %3622 }
 0x283   : > { %3546 = vpush %v3623_v58  ;;  %v2623_v58 = vld [vmem:[%s4756_s4 + $0x28] sm:$0xff] }
 0x2b4   : > { %s3547_s13 = spop %3546 }
 0x2b5   : > { %v2569_v22 = vstv %s3547_s13 }
 0x2b6   : > { %v2570_v13 = vmul.f32 %v2569_v22, %v2553_v32  ;;  %v2571_v26 = vmul.f32 %v2569_v22, %v2554_v25  ;;  %v2572_v20 = vmul.f32 %v2569_v22, %v2555_v6  ;;  %v2573_v63 = vmul.f32 %v2569_v22, %v2556_v28 }
 0x2b7   : > { %v2574_v31 = vmul.f32 %v2569_v22, %v2557_v53  ;;  %v2575_v33 = vmul.f32 %v2569_v22, %v2558_v24  ;;  %v2576_v54 = vmul.f32 %v2569_v22, %v2559_v51  ;;  %v2577_v55 = vmul.f32 %v2569_v22, %v2560_v8  ;;  %v2625_v53 = vld [vmem:[%s4756_s4 + $0x38] sm:$0xff]  ;;  %v2626_v24 = vld [vmem:[%s4756_s4 + $0x40] sm:$0xff]  ;;  %v2627_v51 = vld [vmem:[%s4756_s4 + $0x48] sm:$0xff] }
 0x2b8   : > { %v2578_v57 = vmul.f32 %v2569_v22, %v2561_v0  ;;  %v2579_v16 = vmul.f32 %v2569_v22, %v2562_v61  ;;  %v2580_v37 = vmul.f32 %v2569_v22, %v2563_v45  ;;  %v2581_v47 = vmul.f32 %v2569_v22, %v2564_v1  ;;  %v2628_v1 = vld [vmem:[%s4756_s4 + $0x50] sm:$0xff] }
 0x2b9   : > { %v2582_v35 = vmul.f32 %v2569_v22, %v2565_v34  ;;  %v2583_v18 = vmul.f32 %v2569_v22, %v2566_v5  ;;  %v2584_v17 = vmul.f32 %v2569_v22, %v2567_v7  ;;  %v2585_v38 = vmul.f32 %v2569_v22, %v2568_v59  ;;  %v2629_v34 = vld [vmem:[%s4756_s4 + $0x58] sm:$0xff]  ;;  %v2630_v5 = vld [vmem:[%s4756_s4 + $0x60] sm:$0xff]  ;;  %v2631_v7 = vld [vmem:[%s4756_s4 + $0x68] sm:$0xff] }
 0x2ba   : > { %v2602_v12 = vmul.f32 %v2586_v52, %v2570_v13  ;;  %v2603_v15 = vmul.f32 %v2587_v50, %v2571_v26  ;;  %v2604_v43 = vmul.f32 %v2588_v36, %v2572_v20  ;;  %v2605_v42 = vmul.f32 %v2589_v27, %v2573_v63  ;;  %v2632_v59 = vld [vmem:[%s4756_s4 + $0x70] sm:$0xff]  ;;  %v2633_v22 = vld [vmem:[%s4756_s4 + $0x78] sm:$0xff] }
 0x2bb   : > { %v2606_v62 = vmul.f32 %v2590_v3, %v2574_v31  ;;  %v2607_v2 = vmul.f32 %v2591_v30, %v2575_v33  ;;  %v2608_v39 = vmul.f32 %v2592_v11, %v2576_v54  ;;  %v2609_v10 = vmul.f32 %v2593_v21, %v2577_v55 }
 0x2bc   : > { %v2610_v32 = vmul.f32 %v2594_v40, %v2578_v57  ;;  %v2611_v25 = vmul.f32 %v2595_v29, %v2579_v16  ;;  %v2612_v6 = vmul.f32 %v2596_v41, %v2580_v37  ;;  %v2613_v28 = vmul.f32 %v2597_v60, %v2581_v47 }
 0x2bd   : > { %v2614_v8 = vmul.f32 %v2598_v56, %v2582_v35  ;;  %v2615_v0 = vmul.f32 %v2599_v46, %v2583_v18  ;;  %v2616_v61 = vmul.f32 %v2600_v49, %v2584_v17  ;;  %v2617_v45 = vmul.f32 %v2601_v9, %v2585_v38 }
 0x2be   : > { %v2634_v52 = vadd.f32 %v2618_v14, %v2602_v12  ;;  %v2635_v50 = vadd.f32 %v2619_v19, %v2603_v15  ;;  %v2636_v36 = vadd.f32 %v2620_v23, %v2604_v43  ;;  %v2637_v27 = vadd.f32 %v2621_v44, %v2605_v42 }
 0x2bf   : > { %v2638_v13 = vadd.f32 %v2622_v48, %v2606_v62  ;;  %v2639_v26 = vadd.f32 %v2623_v58, %v2607_v2  ;;  %v2640_v20 = vadd.f32 %v2624_v4, %v2608_v39  ;;  %v2641_v63 = vadd.f32 %v2625_v53, %v2609_v10 }
 0x2c0   : > { %v2642_v3 = vadd.f32 %v2626_v24, %v2610_v32  ;;  %v2643_v30 = vadd.f32 %v2627_v51, %v2611_v25  ;;  %v2644_v11 = vadd.f32 %v2628_v1, %v2612_v6  ;;  %v2645_v21 = vadd.f32 %v2629_v34, %v2613_v28 }
 0x2c1   : > { %v2646_v31 = vadd.f32 %v2630_v5, %v2614_v8  ;;  %v2647_v33 = vadd.f32 %v2631_v7, %v2615_v0  ;;  %v2648_v54 = vadd.f32 %v2632_v59, %v2616_v61  ;;  %v2649_v55 = vadd.f32 %v2633_v22, %v2617_v45 }
 0x2c2   : > { %vm2650_vm3 = vcmp.gt.f32.partialorder %v2634_v52, 0.0  ;;  %vm2651_vm4 = vcmp.gt.f32.partialorder %v2635_v50, 0.0  ;;  %vm2652_vm5 = vcmp.gt.f32.partialorder %v2636_v36, 0.0  ;;  %vm2653_vm6 = vcmp.gt.f32.partialorder %v2637_v27, 0.0 }
 0x2c3   : > { %vm2654_vm7 = vcmp.gt.f32.partialorder %v2638_v13, 0.0  ;;  %vm2655_vm8 = vcmp.gt.f32.partialorder %v2639_v26, 0.0  ;;  %vm2656_vm9 = vcmp.gt.f32.partialorder %v2640_v20, 0.0  ;;  %vm2657_vm10 = vcmp.gt.f32.partialorder %v2641_v63, 0.0 }
 0x2c4   : > { %vm2658_vm11 = vcmp.gt.f32.partialorder %v2642_v3, 0.0  ;;  %vm2659_vm12 = vcmp.gt.f32.partialorder %v2643_v30, 0.0  ;;  %vm2660_vm13 = vcmp.gt.f32.partialorder %v2644_v11, 0.0  ;;  %vm2661_vm14 = vcmp.gt.f32.partialorder %v2645_v21, 0.0 }
 0x2c5   : > { %vm2662_vm15 = vcmp.gt.f32.partialorder %v2646_v31, 0.0  ;;  %vm2663_vm0 = vcmp.gt.f32.partialorder %v2647_v33, 0.0  ;;  %vm2664_vm1 = vcmp.gt.f32.partialorder %v2648_v54, 0.0  ;;  %vm2665_vm2 = vcmp.gt.f32.partialorder %v2649_v55, 0.0 }
 0x2c6   : > { %v2666_v40 = vmul.f32 0.01, %v2634_v52  ;;  %v2667_v29 = vmul.f32 0.01, %v2635_v50  ;;  %v2668_v41 = vmul.f32 0.01, %v2636_v36 }
 0x2c7   : > { %v2669_v57 = vmul.f32 0.01, %v2637_v27  ;;  %v2670_v16 = vmul.f32 0.01, %v2638_v13  ;;  %v2671_v37 = vmul.f32 0.01, %v2639_v26 }
 0x2c8   : > { %v2672_v47 = vmul.f32 0.01, %v2640_v20  ;;  %v2673_v60 = vmul.f32 0.01, %v2641_v63  ;;  %v2674_v56 = vmul.f32 0.01, %v2642_v3  ;;  %v2682_v46 = vsel %vm2650_vm3, %v2634_v52, %v2666_v40 }
 0x2c9   : > { %v2675_v35 = vmul.f32 0.01, %v2643_v30  ;;  %v2676_v18 = vmul.f32 0.01, %v2644_v11  ;;  %v2677_v17 = vmul.f32 0.01, %v2645_v21  ;;  %v2683_v38 = vsel %vm2651_vm4, %v2635_v50, %v2667_v29  ;;  %2698 = vst [vmem:[%s4484_s17] sm:$0xff] %v2682_v46 }
 0x2ca   : > { %v2678_v49 = vmul.f32 0.01, %v2646_v31  ;;  %v2679_v9 = vmul.f32 0.01, %v2647_v33  ;;  %v2680_v14 = vmul.f32 0.01, %v2648_v54  ;;  %v2684_v12 = vsel %vm2652_vm5, %v2636_v36, %v2668_v41 }
 0x2cb   : > { %2699 = vst [vmem:[%s4484_s17 + $0x8] sm:$0xff] %v2683_v38  ;;  %v2681_v15 = vmul.f32 0.01, %v2649_v55  ;;  %v2685_v43 = vsel %vm2653_vm6, %v2637_v27, %v2669_v57  ;;  %v2686_v42 = vsel %vm2654_vm7, %v2638_v13, %v2670_v16  ;;  %v2687_v19 = vsel %vm2655_vm8, %v2639_v26, %v2671_v37  ;;  %2700 = vst [vmem:[%s4484_s17 + $0x10] sm:$0xff] %v2684_v12 }
 0x2cc   : > { %v2688_v23 = vsel %vm2656_vm9, %v2640_v20, %v2672_v47  ;;  %v2689_v44 = vsel %vm2657_vm10, %v2641_v63, %v2673_v60  ;;  %v2690_v62 = vsel %vm2658_vm11, %v2642_v3, %v2674_v56  ;;  %v2691_v2 = vsel %vm2659_vm12, %v2643_v30, %v2675_v35  ;;  %2701 = vst [vmem:[%s4484_s17 + $0x18] sm:$0xff] %v2685_v43 }
 0x2cd   : > { %2702 = vst [vmem:[%s4484_s17 + $0x20] sm:$0xff] %v2686_v42  ;;  %2703 = vst [vmem:[%s4484_s17 + $0x28] sm:$0xff] %v2687_v19  ;;  %v2692_v39 = vsel %vm2660_vm13, %v2644_v11, %v2676_v18  ;;  %v2693_v10 = vsel %vm2661_vm14, %v2645_v21, %v2677_v17  ;;  %v2694_v48 = vsel %vm2662_vm15, %v2646_v31, %v2678_v49 }
 0x2ce   : > { %v2695_v58 = vsel %vm2663_vm0, %v2647_v33, %v2679_v9  ;;  %2704 = vst [vmem:[%s4484_s17 + $0x30] sm:$0xff] %v2688_v23  ;;  %2705 = vst [vmem:[%s4484_s17 + $0x38] sm:$0xff] %v2689_v44  ;;  %v2696_v4 = vsel %vm2664_vm1, %v2648_v54, %v2680_v14  ;;  %v2697_v32 = vsel %vm2665_vm2, %v2649_v55, %v2681_v15 }
 0x2cf   : > { %2706 = vst [vmem:[%s4484_s17 + $0x40] sm:$0xff] %v2690_v62  ;;  %2707 = vst [vmem:[%s4484_s17 + $0x48] sm:$0xff] %v2691_v2 }
 0x2d0   : > { %2708 = vst [vmem:[%s4484_s17 + $0x50] sm:$0xff] %v2692_v39  ;;  %2709 = vst [vmem:[%s4484_s17 + $0x58] sm:$0xff] %v2693_v10 }
 0x2d1   : > { %2710 = vst [vmem:[%s4484_s17 + $0x60] sm:$0xff] %v2694_v48  ;;  %2711 = vst [vmem:[%s4484_s17 + $0x68] sm:$0xff] %v2695_v58 }
 0x2d2   : > { %2712 = vst [vmem:[%s4484_s17 + $0x70] sm:$0xff] %v2696_v4  ;;  %2713 = vst [vmem:[%s4484_s17 + $0x78] sm:$0xff] %v2697_v32 }
 0x2d3 PF: > { %s3151_s12 = sshll.u32 %s3704_s22, 11  ;;  %s2730_s15 = sshll.u32 %s4484_s17, 4  ;;  %s4697_s15 = int_to_ptr.vmem [resolvable:$true] %s2730_s15 }
 0x2d4   : > { %s4694_s13 = scalar_lea.hbm %s4757_s5, %s3151_s12  ;;  %s4769_s10 = sand.u32 1, %s3692_s19  }
 0x2d5   : > { %s4701_s16 = scalar_lea.sflag [#allocation4], %s4769_s10  ;;  %s3624_s21 = scalar_lea.vmem %s4697_s15, 2048 }
 0x2d6   : > { %p3625_p2 = scmp.ne.s32.totalorder %s4697_s15, %s3624_s21  ;;  %s3719_s22 = smov [#allocation3]  }
 0x2d7   : > { %s3628_s14 = sshll.u32 %s3719_s22, 4  ;;  %s3629_s14 = int_to_ptr.vmem [resolvable:$false] %s3628_s14 }
 0x2d8   : > { %p3626_p4 = pnand %p3625_p2, %p3801_p3  ;;  %s3630_s26 = scalar_lea.vmem %s3629_s14, 4096 }
 0x2d9   : > { %p3631_p6 = scmp.lt.s32.totalorder %s4697_s15, %s3629_s14  ;;  %p3632_p7 = scmp.lt.s32.totalorder %s3630_s26, %s3624_s21 }
 0x2da   : > { %p3627_p5 = pneg %p3626_p4 }
 0x2db   : > { %p3633_p8 = por %p3632_p7, %p3631_p6 }
 0x2dd   : > { %p3634_p10 = pnand %p3633_p8, %p3627_p5 }
 0x2df   : > { %3637 = shalt.err (!%p3634_p10)
}
 0x2e0   : > { %s3638_s17 = scalar_lea.hbm %s4694_s13, 2048  ;;  %s3642_s12 = scalar_lea.hbm %s4757_s5, 4096 }
 0x2e1   : > { %p3639_p11 = scmp.ne.s32.totalorder %s4694_s13, %s3638_s17  ;;  %p3643_p0 = scmp.lt.s32.totalorder %s4694_s13, %s4757_s5 }
 0x2e2   : > { %p3644_p1 = scmp.lt.s32.totalorder %s3642_s12, %s3638_s17 }
 0x2e3   : > { %p3640_p12 = pnand %p3639_p11, %p3801_p3 }
 0x2e4   : > { %p3645_p2 = por %p3644_p1, %p3643_p0 }
 0x2e5   : > { %p3641_p13 = pneg %p3640_p12 }
 0x2e7   : > { %p3646_p4 = pnand %p3645_p2, %p3641_p13 }
 0x2e9   : > { %3649 = shalt.err (!%p3646_p4)
}
 0x2ea   : > { %s3720_s10 = smov 128   ;;  %s3721_s21 = smov 8  }
 0x2eb   : > { %3548 = dma.vmem_to_hbm [thread:$0]  (%p3801_p3), %s4697_s15, 2048, %s4694_s13, %s4701_s16, %s3720_s10, %s3720_s10, %s3721_s21  }
 0x2ec PF: > { %p3554_p5 = scmp.ge.s32.totalorder %s3716_s25, 2  ;;  %s2745_s22 = sand.u32 1, %s3688_s18  }
 0x2ed   : > { %s2746_s14 = scalar_lea.sflag [#allocation4], %s2745_s22 }
 0x2ee   : > { %p3551_p6 = pnand %p3554_p5, %p3811_p9 }
 0x2f0   : > { %p3552_p7 = pneg %p3551_p6 }
 0x2f2   : > { %3683 = dma.done.wait (%p3552_p7), %s2746_s14, 2048  }
 0x2f3   : > { %3685 = vsyncadd (%p3552_p7), %s2746_s14, 4294965248  ;;  %s18_s25 = sadd.s32 1, %s3716_s25   ;;  %s4770_s18 = smov %s3692_s19 }
 0x2f4   : > { %p15_p8 = scmp.ge.s32.totalorder %s18_s25, 6   ;;  %s4771_s19 = smov %s3696_s20 }
 0x2f5   : > { %s4772_s20 = smov %s3819_s9  ;;  %s4773_s21 = smov %s3708_s23 }
 0x2f6   : > { %s4774_s22 = smov %s3712_s24  ;;  %s4775_s23 = smov %s4778_s28 }
 0x2f7   : > { %s4776_s24 = smov %s4782_s29  ;;  %17 = sbr.rel (!%p15_p8) target bundleno = 5 (0x5), region = 107 }
 0x2fc   :  { %2751 = vsyncpa [#allocation4], 1 }
 0x2fd   :  { %2753 = vsyncpa [#allocation4 + $0x1], 1 }

</bundles_post_ra>
